<compile_context>
chip_gen: v5e
topology: v5e:2x2
jax: 0.10.0
libtpu: 0.0.40
codegen_flags: <defaults>
</compile_context>

<pallas_src>
import math

import numpy as np
import jax
import jax.numpy as jnp
from jax.experimental import pallas as pl
from jax.experimental.pallas import tpu as pltpu


def _round_up(v, m):
    return ((v + m - 1) // m) * m


def _build_pairs(n_win):
    # Exactly mirrors the PyTorch enumeration order of `outputs`.
    pairs = []
    for i in range(n_win):
        for j in range(i + 1, n_win):
            pairs.append(((0, i), (0, j)))
        for k in range(n_win):
            pairs.append(((0, i), (1, k)))
    for i in range(n_win):
        for j in range(i + 1, n_win):
            pairs.append(((1, i), (1, j)))
    return pairs


def _make_fused_kernel(T, B_pad, H, R_pad):
    """Fused LSTM + windowed attention + pairwise sim head kernel."""

    def kernel(x_ref, wih_ref, whh_ref, b_ref,
               wh_ref, om_ref, a_ref, slr_ref,
               wfc_ref, bfc_ref, w1a_ref, w1b_ref, b1_ref,
               w2_ref, b2_ref, w3_ref, b3_ref, w4_ref, b4_ref,
               out_ref, gx_ref, h_ref):
        f32 = jnp.float32
        bf16 = jnp.bfloat16

        # ----- LSTM: hoisted input projection (one lane-dense bf16 matmul) ---
        gx_ref[...] = (jnp.dot(x_ref[...], wih_ref[...],
                               preferred_element_type=f32) + b_ref[...])

        whh = whh_ref[...]                       # (H, 4H) bf16, loaded once

        # TODO(synk): holding W_hh resident in the MXU across the recurrence
        # via pltpu.matmul_push_rhs / matmul_acc_lhs was not adopted: per-step
        # result-pop / accumulator-reset semantics are not safely expressible
        # here, so each step issues one bf16 jnp.dot pass instead.
        h = jnp.zeros((B_pad, H), f32)
        c = jnp.zeros((B_pad, H), f32)
        for t in range(T):                       # statically unrolled recurrence
            r0 = t * B_pad
            g = gx_ref[r0:r0 + B_pad, :]         # (B_pad, 4H) f32
            if t > 0:
                g = g + jnp.dot(h.astype(bf16), whh, preferred_element_type=f32)
            sg = jax.nn.sigmoid(g)               # one full-slab EUP pass (i,f,o)
            gg = jnp.tanh(g[:, 2 * H:3 * H])     # g-gate quarter only
            c = sg[:, H:2 * H] * c + sg[:, 0:H] * gg
            h = sg[:, 3 * H:4 * H] * jnp.tanh(c)
            h_ref[r0:r0 + B_pad, :] = h

        # ----- attention over all (sequence, window) groups at once ----------
        h_all = h_ref[...]                                       # (T*B_pad, H)
        M = jnp.tanh(jnp.dot(h_all.astype(bf16), wh_ref[...],
                             preferred_element_type=f32))        # (TB, H)
        s = jnp.sum(M * om_ref[...], axis=-1, keepdims=True)     # (TB, 1)
        # Global shift is softmax-invariant within each group; scores are
        # bounded by |omega|_1 here so exp() cannot under/overflow.
        s = s - jnp.max(s, axis=0, keepdims=True)
        e = jnp.exp(s)
        A = a_ref[...]                                           # (G_pad, TB) 0/1
        emb = jnp.dot(A, h_all * e, preferred_element_type=f32)  # (G_pad, H)
        denom = jnp.dot(A, e, preferred_element_type=f32)        # (G_pad, 1)
        emb = emb * pl.reciprocal(denom, approx=True)            # per-group softmax

        # ----- stacked pair gather + shared fc, then the sim MLP head --------
        def lin(xv, w_r, b_r):
            return jnp.dot(xv, w_r[...], preferred_element_type=f32) + b_r[...]

        # one gather matmul for BOTH pair operands (rows [0,R_pad)=left,
        # [R_pad,2R_pad)=right), one shared fc+ReLU, then 8-aligned row split.
        e_lr = jnp.dot(slr_ref[...], emb, preferred_element_type=f32)   # (2R_pad, H)
        # TODO(synk): nn.Dropout layers are identity here (eval-mode semantics).
        f_lr = jax.nn.relu(lin(e_lr, wfc_ref, bfc_ref))                 # (2R_pad, 64)
        fa = f_lr[:R_pad, :]
        fb = f_lr[R_pad:, :]
        # concat(fa, fb) @ W1  ==  fa @ W1[:64] + fb @ W1[64:]
        h1 = jax.nn.relu(jnp.dot(fa, w1a_ref[...], preferred_element_type=f32)
                         + jnp.dot(fb, w1b_ref[...], preferred_element_type=f32)
                         + b1_ref[...])
        h2 = jax.nn.relu(lin(h1, w2_ref, b2_ref))
        h3 = jax.nn.relu(lin(h2, w3_ref, b3_ref))
        out_ref[...] = jax.nn.sigmoid(lin(h3, w4_ref, b4_ref)).astype(out_ref.dtype)

    return kernel


def atlstm_forward(x, params, sub_len):
    # x: (N, 2, T, D)
    N, two, T, D = x.shape
    assert two == 2
    H = params['wh'].shape[0]
    q = sub_len
    n_win = T // q
    B = 2 * N
    B_pad = _round_up(max(B, 8), 8)
    TB = T * B_pad
    G_pad = B_pad * n_win
    pairs = _build_pairs(n_win)
    P = len(pairs)
    R = P * N
    R_pad = _round_up(max(R, 8), 8)

    # ---- static constants (baked into the graph) ----------------------------
    # group membership: row r (time-major flat: t=r//B_pad, b=r%B_pad) belongs
    # to group g = b*n_win + w iff b matches and t is inside window w.
    A = np.zeros((G_pad, TB), np.float32)
    for b in range(B_pad):
        for w in range(n_win):
            g = b * n_win + w
            for tq in range(q):
                A[g, (w * q + tq) * B_pad + b] = 1.0
    # stacked pair selection: rows [0, R_pad) select the left embedding of
    # pair p / batch n, rows [R_pad, 2*R_pad) the right one.
    S_lr = np.zeros((2 * R_pad, G_pad), np.float32)
    for p, ((sl, wl), (sr, wr)) in enumerate(pairs):
        for n in range(N):
            r = p * N + n
            S_lr[r, (sl * N + n) * n_win + wl] = 1.0
            S_lr[R_pad + r, (sr * N + n) * n_win + wr] = 1.0

    # ---- both streams batched through one LSTM, time-major flat input -------
    xb = jnp.concatenate([x[:, 0], x[:, 1]], axis=0)            # (2N, T, D)
    xb = jnp.pad(xb, ((0, B_pad - B), (0, 0), (0, 0)))          # (B_pad, T, D)
    x_flat = jnp.transpose(xb, (1, 0, 2)).reshape(TB, D)        # (T*B_pad, D)

    bf16 = jnp.bfloat16
    kernel = _make_fused_kernel(T, B_pad, H, R_pad)
    out = pl.pallas_call(
        kernel,
        out_shape=jax.ShapeDtypeStruct((R_pad, 1), jnp.float32),
        scratch_shapes=[pltpu.VMEM((TB, 4 * H), jnp.float32),   # precomputed x-gates
                        pltpu.VMEM((TB, H), jnp.float32)],      # hidden states
    )(x_flat.astype(bf16), params['wih'].astype(bf16),
      params['whh'].astype(bf16), params['b'],
      params['wh'].astype(bf16), params['omega'],
      jnp.asarray(A), jnp.asarray(S_lr),
      params['wfc'], params['bfc'], params['w1a'], params['w1b'], params['b1'],
      params['w2'], params['b2'], params['w3'], params['b3'],
      params['w4'], params['b4'])

    y = out[:R, 0]
    return y.reshape(P, N).T                     # (N, P) == torch.cat(outputs, dim=1)


# -----------------------------------------------------------------------------
# Parameter init (deterministic, shapes from the module __init__)
# -----------------------------------------------------------------------------
def init_params(key, input_size, hidden_size):
    keys = jax.random.split(key, 12)
    H = hidden_size
    k = 1.0 / math.sqrt(H)
    # fused gate layout: (i, f, g, o) concatenated along the 4H output axis
    wih = jax.random.uniform(keys[0], (input_size, 4 * H), jnp.float32, -k, k)
    whh = jax.random.uniform(keys[1], (H, 4 * H), jnp.float32, -k, k)
    b = (jax.random.uniform(keys[2], (1, 4 * H), jnp.float32, -k, k)
         + jax.random.uniform(keys[3], (1, 4 * H), jnp.float32, -k, k))
    wh = 0.1 * jax.random.normal(keys[4], (H, H), jnp.float32)
    omega = 0.1 * jax.random.normal(keys[5], (1, H), jnp.float32)

    def xavier(kk, fan_in, fan_out):
        std = math.sqrt(2.0 / (fan_in + fan_out))
        return std * jax.random.normal(kk, (fan_in, fan_out), jnp.float32)

    wfc = xavier(keys[6], H, 64)
    w1 = xavier(keys[7], 128, 64)
    return {
        'wih': wih, 'whh': whh, 'b': b, 'wh': wh, 'omega': omega,
        'wfc': wfc, 'bfc': jnp.zeros((1, 64), jnp.float32),
        'w1a': w1[:64], 'w1b': w1[64:], 'b1': jnp.zeros((1, 64), jnp.float32),
        'w2': xavier(keys[8], 64, 32), 'b2': jnp.zeros((1, 32), jnp.float32),
        'w3': xavier(keys[9], 32, 8), 'b3': jnp.zeros((1, 8), jnp.float32),
        'w4': xavier(keys[10], 8, 1), 'b4': jnp.zeros((1, 1), jnp.float32),
    }


if __name__ == "__main__":
    N, T, D = 2, 16, 8
    HIDDEN = 32          # 4H = 128 -> per-step gate slab exactly fills the lane dim
    SUB_LEN = 8          # T // SUB_LEN = 2 windows -> 6 pairwise sim outputs

    key = jax.random.PRNGKey(0)
    kx, kp = jax.random.split(key)
    x = jax.random.normal(kx, (N, 2, T, D), jnp.float32)
    params = init_params(kp, D, HIDDEN)

    fwd = jax.jit(atlstm_forward, static_argnames=('sub_len',))
    out = fwd(x, params, sub_len=SUB_LEN)
    out = jax.block_until_ready(out)

    n_win = T // SUB_LEN
    expected_pairs = 2 * n_win * n_win - n_win   # = 6
    assert out.shape == (N, expected_pairs), out.shape
    assert bool(jnp.all(jnp.isfinite(out)))
    print("KERNEL_OK")
</pallas_src>

<mosaic_0001>
module attributes {stable_mosaic.version = 11 : i64} {
  func.func @kernel(%arg0: memref<128x8xbf16, #tpu.memory_space<vmem>>, %arg1: memref<8x128xbf16, #tpu.memory_space<vmem>>, %arg2: memref<32x128xbf16, #tpu.memory_space<vmem>>, %arg3: memref<1x128xf32, #tpu.memory_space<vmem>>, %arg4: memref<32x32xbf16, #tpu.memory_space<vmem>>, %arg5: memref<1x32xf32, #tpu.memory_space<vmem>>, %arg6: memref<16x128xf32, #tpu.memory_space<vmem>>, %arg7: memref<32x16xf32, #tpu.memory_space<vmem>>, %arg8: memref<32x64xf32, #tpu.memory_space<vmem>>, %arg9: memref<1x64xf32, #tpu.memory_space<vmem>>, %arg10: memref<64x64xf32, #tpu.memory_space<vmem>>, %arg11: memref<64x64xf32, #tpu.memory_space<vmem>>, %arg12: memref<1x64xf32, #tpu.memory_space<vmem>>, %arg13: memref<64x32xf32, #tpu.memory_space<vmem>>, %arg14: memref<1x32xf32, #tpu.memory_space<vmem>>, %arg15: memref<32x8xf32, #tpu.memory_space<vmem>>, %arg16: memref<1x8xf32, #tpu.memory_space<vmem>>, %arg17: memref<8x1xf32, #tpu.memory_space<vmem>>, %arg18: memref<1x1xf32, #tpu.memory_space<vmem>>, %arg19: memref<16x1xf32, #tpu.memory_space<vmem>>, %arg20: memref<128x128xf32, #tpu.memory_space<vmem>>, %arg21: memref<128x32xf32, #tpu.memory_space<vmem>>) attributes {dimension_semantics = [], scalar_prefetch = 0 : i64, scratch_operands = 2 : i64, tpu.core_type = #tpu.core_type<tc>} {
    %c0 = arith.constant 0 : index
    %c0_0 = arith.constant 0 : index
    %0 = vector.load %arg0[%c0, %c0_0] : memref<128x8xbf16, #tpu.memory_space<vmem>>, vector<128x8xbf16>
    %c0_1 = arith.constant 0 : index
    %c0_2 = arith.constant 0 : index
    %1 = vector.load %arg1[%c0_1, %c0_2] : memref<8x128xbf16, #tpu.memory_space<vmem>>, vector<8x128xbf16>
    %cst = arith.constant dense<0.000000e+00> : vector<128x128xf32>
    %2 = tpu.matmul %0, %1, %cst {dimension_numbers = #tpu.dot_dimension_numbers<[1], [0], [0], [1], [0, 0, 1, 1], [], []>} : vector<128x8xbf16>, vector<8x128xbf16>, vector<128x128xf32> -> vector<128x128xf32>
    %c0_3 = arith.constant 0 : index
    %c0_4 = arith.constant 0 : index
    %3 = vector.load %arg3[%c0_3, %c0_4] : memref<1x128xf32, #tpu.memory_space<vmem>>, vector<1x128xf32>
    %4 = vector.broadcast %3 : vector<1x128xf32> to vector<128x128xf32>
    %5 = arith.addf %2, %4 : vector<128x128xf32>
    %c0_5 = arith.constant 0 : index
    %c0_6 = arith.constant 0 : index
    %6 = vector.load %arg20[%c0_5, %c0_6] : memref<128x128xf32, #tpu.memory_space<vmem>>, vector<128x128xf32>
    tpu.vector_store %arg20[%c0_5, %c0_6], %5 {strides = array<i32>} : memref<128x128xf32, #tpu.memory_space<vmem>>, vector<128x128xf32>,
    %c0_7 = arith.constant 0 : index
    %c0_8 = arith.constant 0 : index
    %7 = vector.load %arg2[%c0_7, %c0_8] : memref<32x128xbf16, #tpu.memory_space<vmem>>, vector<32x128xbf16>
    %cst_9 = arith.constant 0.000000e+00 : f32
    %8 = vector.broadcast %cst_9 : f32 to vector<8x32xf32>
    %c0_10 = arith.constant 0 : index
    %c0_11 = arith.constant 0 : index
    %9 = vector.load %arg20[%c0_10, %c0_11] : memref<128x128xf32, #tpu.memory_space<vmem>>, vector<8x128xf32>
    %10 = arith.negf %9 : vector<8x128xf32>
    %11 = math.exp %10 : vector<8x128xf32>
    %cst_12 = arith.constant 1.000000e+00 : f32
    %12 = vector.broadcast %cst_12 : f32 to vector<8x128xf32>
    %13 = arith.addf %12, %11 : vector<8x128xf32>
    %14 = arith.divf %12, %13 : vector<8x128xf32>
    %15 = vector.extract_strided_slice %9 {offsets = [0, 64], sizes = [8, 32], strides = [1, 1]} : vector<8x128xf32> to vector<8x32xf32>
    %16 = math.tanh %15 : vector<8x32xf32>
    %17 = vector.extract_strided_slice %14 {offsets = [0, 32], sizes = [8, 32], strides = [1, 1]} : vector<8x128xf32> to vector<8x32xf32>
    %18 = arith.mulf %17, %8 : vector<8x32xf32>
    %19 = vector.extract_strided_slice %14 {offsets = [0, 0], sizes = [8, 32], strides = [1, 1]} : vector<8x128xf32> to vector<8x32xf32>
    %20 = arith.mulf %19, %16 : vector<8x32xf32>
    %21 = arith.addf %18, %20 : vector<8x32xf32>
    %22 = vector.extract_strided_slice %14 {offsets = [0, 96], sizes = [8, 32], strides = [1, 1]} : vector<8x128xf32> to vector<8x32xf32>
    %23 = math.tanh %21 : vector<8x32xf32>
    %24 = arith.mulf %22, %23 : vector<8x32xf32>
    %c0_13 = arith.constant 0 : index
    %c0_14 = arith.constant 0 : index
    %25 = vector.load %arg21[%c0_13, %c0_14] : memref<128x32xf32, #tpu.memory_space<vmem>>, vector<8x32xf32>
    tpu.vector_store %arg21[%c0_13, %c0_14], %24 {strides = array<i32>} : memref<128x32xf32, #tpu.memory_space<vmem>>, vector<8x32xf32>,
    %c8 = arith.constant 8 : index
    %c0_15 = arith.constant 0 : index
    %26 = vector.load %arg20[%c8, %c0_15] : memref<128x128xf32, #tpu.memory_space<vmem>>, vector<8x128xf32>
    %27 = arith.truncf %24 : vector<8x32xf32> to vector<8x32xbf16>
    %cst_16 = arith.constant dense<0.000000e+00> : vector<8x128xf32>
    %28 = tpu.matmul %27, %7, %cst_16 {dimension_numbers = #tpu.dot_dimension_numbers<[1], [0], [0], [1], [0, 0, 1, 1], [], []>} : vector<8x32xbf16>, vector<32x128xbf16>, vector<8x128xf32> -> vector<8x128xf32>
    %29 = arith.addf %26, %28 : vector<8x128xf32>
    %30 = arith.negf %29 : vector<8x128xf32>
    %31 = math.exp %30 : vector<8x128xf32>
    %cst_17 = arith.constant 1.000000e+00 : f32
    %32 = vector.broadcast %cst_17 : f32 to vector<8x128xf32>
    %33 = arith.addf %32, %31 : vector<8x128xf32>
    %34 = arith.divf %32, %33 : vector<8x128xf32>
    %35 = vector.extract_strided_slice %29 {offsets = [0, 64], sizes = [8, 32], strides = [1, 1]} : vector<8x128xf32> to vector<8x32xf32>
    %36 = math.tanh %35 : vector<8x32xf32>
    %37 = vector.extract_strided_slice %34 {offsets = [0, 32], sizes = [8, 32], strides = [1, 1]} : vector<8x128xf32> to vector<8x32xf32>
    %38 = arith.mulf %37, %21 : vector<8x32xf32>
    %39 = vector.extract_strided_slice %34 {offsets = [0, 0], sizes = [8, 32], strides = [1, 1]} : vector<8x128xf32> to vector<8x32xf32>
    %40 = arith.mulf %39, %36 : vector<8x32xf32>
    %41 = arith.addf %38, %40 : vector<8x32xf32>
    %42 = vector.extract_strided_slice %34 {offsets = [0, 96], sizes = [8, 32], strides = [1, 1]} : vector<8x128xf32> to vector<8x32xf32>
    %43 = math.tanh %41 : vector<8x32xf32>
    %44 = arith.mulf %42, %43 : vector<8x32xf32>
    %c8_18 = arith.constant 8 : index
    %c0_19 = arith.constant 0 : index
    %45 = vector.load %arg21[%c8_18, %c0_19] : memref<128x32xf32, #tpu.memory_space<vmem>>, vector<8x32xf32>
    tpu.vector_store %arg21[%c8_18, %c0_19], %44 {strides = array<i32>} : memref<128x32xf32, #tpu.memory_space<vmem>>, vector<8x32xf32>,
    %c16 = arith.constant 16 : index
    %c0_20 = arith.constant 0 : index
    %46 = vector.load %arg20[%c16, %c0_20] : memref<128x128xf32, #tpu.memory_space<vmem>>, vector<8x128xf32>
    %47 = arith.truncf %44 : vector<8x32xf32> to vector<8x32xbf16>
    %cst_21 = arith.constant dense<0.000000e+00> : vector<8x128xf32>
    %48 = tpu.matmul %47, %7, %cst_21 {dimension_numbers = #tpu.dot_dimension_numbers<[1], [0], [0], [1], [0, 0, 1, 1], [], []>} : vector<8x32xbf16>, vector<32x128xbf16>, vector<8x128xf32> -> vector<8x128xf32>
    %49 = arith.addf %46, %48 : vector<8x128xf32>
    %50 = arith.negf %49 : vector<8x128xf32>
    %51 = math.exp %50 : vector<8x128xf32>
    %cst_22 = arith.constant 1.000000e+00 : f32
    %52 = vector.broadcast %cst_22 : f32 to vector<8x128xf32>
    %53 = arith.addf %52, %51 : vector<8x128xf32>
    %54 = arith.divf %52, %53 : vector<8x128xf32>
    %55 = vector.extract_strided_slice %49 {offsets = [0, 64], sizes = [8, 32], strides = [1, 1]} : vector<8x128xf32> to vector<8x32xf32>
    %56 = math.tanh %55 : vector<8x32xf32>
    %57 = vector.extract_strided_slice %54 {offsets = [0, 32], sizes = [8, 32], strides = [1, 1]} : vector<8x128xf32> to vector<8x32xf32>
    %58 = arith.mulf %57, %41 : vector<8x32xf32>
    %59 = vector.extract_strided_slice %54 {offsets = [0, 0], sizes = [8, 32], strides = [1, 1]} : vector<8x128xf32> to vector<8x32xf32>
    %60 = arith.mulf %59, %56 : vector<8x32xf32>
    %61 = arith.addf %58, %60 : vector<8x32xf32>
    %62 = vector.extract_strided_slice %54 {offsets = [0, 96], sizes = [8, 32], strides = [1, 1]} : vector<8x128xf32> to vector<8x32xf32>
    %63 = math.tanh %61 : vector<8x32xf32>
    %64 = arith.mulf %62, %63 : vector<8x32xf32>
    %c16_23 = arith.constant 16 : index
    %c0_24 = arith.constant 0 : index
    %65 = vector.load %arg21[%c16_23, %c0_24] : memref<128x32xf32, #tpu.memory_space<vmem>>, vector<8x32xf32>
    tpu.vector_store %arg21[%c16_23, %c0_24], %64 {strides = array<i32>} : memref<128x32xf32, #tpu.memory_space<vmem>>, vector<8x32xf32>,
    %c24 = arith.constant 24 : index
    %c0_25 = arith.constant 0 : index
    %66 = vector.load %arg20[%c24, %c0_25] : memref<128x128xf32, #tpu.memory_space<vmem>>, vector<8x128xf32>
    %67 = arith.truncf %64 : vector<8x32xf32> to vector<8x32xbf16>
    %cst_26 = arith.constant dense<0.000000e+00> : vector<8x128xf32>
    %68 = tpu.matmul %67, %7, %cst_26 {dimension_numbers = #tpu.dot_dimension_numbers<[1], [0], [0], [1], [0, 0, 1, 1], [], []>} : vector<8x32xbf16>, vector<32x128xbf16>, vector<8x128xf32> -> vector<8x128xf32>
    %69 = arith.addf %66, %68 : vector<8x128xf32>
    %70 = arith.negf %69 : vector<8x128xf32>
    %71 = math.exp %70 : vector<8x128xf32>
    %cst_27 = arith.constant 1.000000e+00 : f32
    %72 = vector.broadcast %cst_27 : f32 to vector<8x128xf32>
    %73 = arith.addf %72, %71 : vector<8x128xf32>
    %74 = arith.divf %72, %73 : vector<8x128xf32>
    %75 = vector.extract_strided_slice %69 {offsets = [0, 64], sizes = [8, 32], strides = [1, 1]} : vector<8x128xf32> to vector<8x32xf32>
    %76 = math.tanh %75 : vector<8x32xf32>
    %77 = vector.extract_strided_slice %74 {offsets = [0, 32], sizes = [8, 32], strides = [1, 1]} : vector<8x128xf32> to vector<8x32xf32>
    %78 = arith.mulf %77, %61 : vector<8x32xf32>
    %79 = vector.extract_strided_slice %74 {offsets = [0, 0], sizes = [8, 32], strides = [1, 1]} : vector<8x128xf32> to vector<8x32xf32>
    %80 = arith.mulf %79, %76 : vector<8x32xf32>
    %81 = arith.addf %78, %80 : vector<8x32xf32>
    %82 = vector.extract_strided_slice %74 {offsets = [0, 96], sizes = [8, 32], strides = [1, 1]} : vector<8x128xf32> to vector<8x32xf32>
    %83 = math.tanh %81 : vector<8x32xf32>
    %84 = arith.mulf %82, %83 : vector<8x32xf32>
    %c24_28 = arith.constant 24 : index
    %c0_29 = arith.constant 0 : index
    %85 = vector.load %arg21[%c24_28, %c0_29] : memref<128x32xf32, #tpu.memory_space<vmem>>, vector<8x32xf32>
    tpu.vector_store %arg21[%c24_28, %c0_29], %84 {strides = array<i32>} : memref<128x32xf32, #tpu.memory_space<vmem>>, vector<8x32xf32>,
    %c32 = arith.constant 32 : index
    %c0_30 = arith.constant 0 : index
    %86 = vector.load %arg20[%c32, %c0_30] : memref<128x128xf32, #tpu.memory_space<vmem>>, vector<8x128xf32>
    %87 = arith.truncf %84 : vector<8x32xf32> to vector<8x32xbf16>
    %cst_31 = arith.constant dense<0.000000e+00> : vector<8x128xf32>
    %88 = tpu.matmul %87, %7, %cst_31 {dimension_numbers = #tpu.dot_dimension_numbers<[1], [0], [0], [1], [0, 0, 1, 1], [], []>} : vector<8x32xbf16>, vector<32x128xbf16>, vector<8x128xf32> -> vector<8x128xf32>
    %89 = arith.addf %86, %88 : vector<8x128xf32>
    %90 = arith.negf %89 : vector<8x128xf32>
    %91 = math.exp %90 : vector<8x128xf32>
    %cst_32 = arith.constant 1.000000e+00 : f32
    %92 = vector.broadcast %cst_32 : f32 to vector<8x128xf32>
    %93 = arith.addf %92, %91 : vector<8x128xf32>
    %94 = arith.divf %92, %93 : vector<8x128xf32>
    %95 = vector.extract_strided_slice %89 {offsets = [0, 64], sizes = [8, 32], strides = [1, 1]} : vector<8x128xf32> to vector<8x32xf32>
    %96 = math.tanh %95 : vector<8x32xf32>
    %97 = vector.extract_strided_slice %94 {offsets = [0, 32], sizes = [8, 32], strides = [1, 1]} : vector<8x128xf32> to vector<8x32xf32>
    %98 = arith.mulf %97, %81 : vector<8x32xf32>
    %99 = vector.extract_strided_slice %94 {offsets = [0, 0], sizes = [8, 32], strides = [1, 1]} : vector<8x128xf32> to vector<8x32xf32>
    %100 = arith.mulf %99, %96 : vector<8x32xf32>
    %101 = arith.addf %98, %100 : vector<8x32xf32>
    %102 = vector.extract_strided_slice %94 {offsets = [0, 96], sizes = [8, 32], strides = [1, 1]} : vector<8x128xf32> to vector<8x32xf32>
    %103 = math.tanh %101 : vector<8x32xf32>
    %104 = arith.mulf %102, %103 : vector<8x32xf32>
    %c32_33 = arith.constant 32 : index
    %c0_34 = arith.constant 0 : index
    %105 = vector.load %arg21[%c32_33, %c0_34] : memref<128x32xf32, #tpu.memory_space<vmem>>, vector<8x32xf32>
    tpu.vector_store %arg21[%c32_33, %c0_34], %104 {strides = array<i32>} : memref<128x32xf32, #tpu.memory_space<vmem>>, vector<8x32xf32>,
    %c40 = arith.constant 40 : index
    %c0_35 = arith.constant 0 : index
    %106 = vector.load %arg20[%c40, %c0_35] : memref<128x128xf32, #tpu.memory_space<vmem>>, vector<8x128xf32>
    %107 = arith.truncf %104 : vector<8x32xf32> to vector<8x32xbf16>
    %cst_36 = arith.constant dense<0.000000e+00> : vector<8x128xf32>
    %108 = tpu.matmul %107, %7, %cst_36 {dimension_numbers = #tpu.dot_dimension_numbers<[1], [0], [0], [1], [0, 0, 1, 1], [], []>} : vector<8x32xbf16>, vector<32x128xbf16>, vector<8x128xf32> -> vector<8x128xf32>
    %109 = arith.addf %106, %108 : vector<8x128xf32>
    %110 = arith.negf %109 : vector<8x128xf32>
    %111 = math.exp %110 : vector<8x128xf32>
    %cst_37 = arith.constant 1.000000e+00 : f32
    %112 = vector.broadcast %cst_37 : f32 to vector<8x128xf32>
    %113 = arith.addf %112, %111 : vector<8x128xf32>
    %114 = arith.divf %112, %113 : vector<8x128xf32>
    %115 = vector.extract_strided_slice %109 {offsets = [0, 64], sizes = [8, 32], strides = [1, 1]} : vector<8x128xf32> to vector<8x32xf32>
    %116 = math.tanh %115 : vector<8x32xf32>
    %117 = vector.extract_strided_slice %114 {offsets = [0, 32], sizes = [8, 32], strides = [1, 1]} : vector<8x128xf32> to vector<8x32xf32>
    %118 = arith.mulf %117, %101 : vector<8x32xf32>
    %119 = vector.extract_strided_slice %114 {offsets = [0, 0], sizes = [8, 32], strides = [1, 1]} : vector<8x128xf32> to vector<8x32xf32>
    %120 = arith.mulf %119, %116 : vector<8x32xf32>
    %121 = arith.addf %118, %120 : vector<8x32xf32>
    %122 = vector.extract_strided_slice %114 {offsets = [0, 96], sizes = [8, 32], strides = [1, 1]} : vector<8x128xf32> to vector<8x32xf32>
    %123 = math.tanh %121 : vector<8x32xf32>
    %124 = arith.mulf %122, %123 : vector<8x32xf32>
    %c40_38 = arith.constant 40 : index
    %c0_39 = arith.constant 0 : index
    %125 = vector.load %arg21[%c40_38, %c0_39] : memref<128x32xf32, #tpu.memory_space<vmem>>, vector<8x32xf32>
    tpu.vector_store %arg21[%c40_38, %c0_39], %124 {strides = array<i32>} : memref<128x32xf32, #tpu.memory_space<vmem>>, vector<8x32xf32>,
    %c48 = arith.constant 48 : index
    %c0_40 = arith.constant 0 : index
    %126 = vector.load %arg20[%c48, %c0_40] : memref<128x128xf32, #tpu.memory_space<vmem>>, vector<8x128xf32>
    %127 = arith.truncf %124 : vector<8x32xf32> to vector<8x32xbf16>
    %cst_41 = arith.constant dense<0.000000e+00> : vector<8x128xf32>
    %128 = tpu.matmul %127, %7, %cst_41 {dimension_numbers = #tpu.dot_dimension_numbers<[1], [0], [0], [1], [0, 0, 1, 1], [], []>} : vector<8x32xbf16>, vector<32x128xbf16>, vector<8x128xf32> -> vector<8x128xf32>
    %129 = arith.addf %126, %128 : vector<8x128xf32>
    %130 = arith.negf %129 : vector<8x128xf32>
    %131 = math.exp %130 : vector<8x128xf32>
    %cst_42 = arith.constant 1.000000e+00 : f32
    %132 = vector.broadcast %cst_42 : f32 to vector<8x128xf32>
    %133 = arith.addf %132, %131 : vector<8x128xf32>
    %134 = arith.divf %132, %133 : vector<8x128xf32>
    %135 = vector.extract_strided_slice %129 {offsets = [0, 64], sizes = [8, 32], strides = [1, 1]} : vector<8x128xf32> to vector<8x32xf32>
    %136 = math.tanh %135 : vector<8x32xf32>
    %137 = vector.extract_strided_slice %134 {offsets = [0, 32], sizes = [8, 32], strides = [1, 1]} : vector<8x128xf32> to vector<8x32xf32>
    %138 = arith.mulf %137, %121 : vector<8x32xf32>
    %139 = vector.extract_strided_slice %134 {offsets = [0, 0], sizes = [8, 32], strides = [1, 1]} : vector<8x128xf32> to vector<8x32xf32>
    %140 = arith.mulf %139, %136 : vector<8x32xf32>
    %141 = arith.addf %138, %140 : vector<8x32xf32>
    %142 = vector.extract_strided_slice %134 {offsets = [0, 96], sizes = [8, 32], strides = [1, 1]} : vector<8x128xf32> to vector<8x32xf32>
    %143 = math.tanh %141 : vector<8x32xf32>
    %144 = arith.mulf %142, %143 : vector<8x32xf32>
    %c48_43 = arith.constant 48 : index
    %c0_44 = arith.constant 0 : index
    %145 = vector.load %arg21[%c48_43, %c0_44] : memref<128x32xf32, #tpu.memory_space<vmem>>, vector<8x32xf32>
    tpu.vector_store %arg21[%c48_43, %c0_44], %144 {strides = array<i32>} : memref<128x32xf32, #tpu.memory_space<vmem>>, vector<8x32xf32>,
    %c56 = arith.constant 56 : index
    %c0_45 = arith.constant 0 : index
    %146 = vector.load %arg20[%c56, %c0_45] : memref<128x128xf32, #tpu.memory_space<vmem>>, vector<8x128xf32>
    %147 = arith.truncf %144 : vector<8x32xf32> to vector<8x32xbf16>
    %cst_46 = arith.constant dense<0.000000e+00> : vector<8x128xf32>
    %148 = tpu.matmul %147, %7, %cst_46 {dimension_numbers = #tpu.dot_dimension_numbers<[1], [0], [0], [1], [0, 0, 1, 1], [], []>} : vector<8x32xbf16>, vector<32x128xbf16>, vector<8x128xf32> -> vector<8x128xf32>
    %149 = arith.addf %146, %148 : vector<8x128xf32>
    %150 = arith.negf %149 : vector<8x128xf32>
    %151 = math.exp %150 : vector<8x128xf32>
    %cst_47 = arith.constant 1.000000e+00 : f32
    %152 = vector.broadcast %cst_47 : f32 to vector<8x128xf32>
    %153 = arith.addf %152, %151 : vector<8x128xf32>
    %154 = arith.divf %152, %153 : vector<8x128xf32>
    %155 = vector.extract_strided_slice %149 {offsets = [0, 64], sizes = [8, 32], strides = [1, 1]} : vector<8x128xf32> to vector<8x32xf32>
    %156 = math.tanh %155 : vector<8x32xf32>
    %157 = vector.extract_strided_slice %154 {offsets = [0, 32], sizes = [8, 32], strides = [1, 1]} : vector<8x128xf32> to vector<8x32xf32>
    %158 = arith.mulf %157, %141 : vector<8x32xf32>
    %159 = vector.extract_strided_slice %154 {offsets = [0, 0], sizes = [8, 32], strides = [1, 1]} : vector<8x128xf32> to vector<8x32xf32>
    %160 = arith.mulf %159, %156 : vector<8x32xf32>
    %161 = arith.addf %158, %160 : vector<8x32xf32>
    %162 = vector.extract_strided_slice %154 {offsets = [0, 96], sizes = [8, 32], strides = [1, 1]} : vector<8x128xf32> to vector<8x32xf32>
    %163 = math.tanh %161 : vector<8x32xf32>
    %164 = arith.mulf %162, %163 : vector<8x32xf32>
    %c56_48 = arith.constant 56 : index
    %c0_49 = arith.constant 0 : index
    %165 = vector.load %arg21[%c56_48, %c0_49] : memref<128x32xf32, #tpu.memory_space<vmem>>, vector<8x32xf32>
    tpu.vector_store %arg21[%c56_48, %c0_49], %164 {strides = array<i32>} : memref<128x32xf32, #tpu.memory_space<vmem>>, vector<8x32xf32>,
    %c64 = arith.constant 64 : index
    %c0_50 = arith.constant 0 : index
    %166 = vector.load %arg20[%c64, %c0_50] : memref<128x128xf32, #tpu.memory_space<vmem>>, vector<8x128xf32>
    %167 = arith.truncf %164 : vector<8x32xf32> to vector<8x32xbf16>
    %cst_51 = arith.constant dense<0.000000e+00> : vector<8x128xf32>
    %168 = tpu.matmul %167, %7, %cst_51 {dimension_numbers = #tpu.dot_dimension_numbers<[1], [0], [0], [1], [0, 0, 1, 1], [], []>} : vector<8x32xbf16>, vector<32x128xbf16>, vector<8x128xf32> -> vector<8x128xf32>
    %169 = arith.addf %166, %168 : vector<8x128xf32>
    %170 = arith.negf %169 : vector<8x128xf32>
    %171 = math.exp %170 : vector<8x128xf32>
    %cst_52 = arith.constant 1.000000e+00 : f32
    %172 = vector.broadcast %cst_52 : f32 to vector<8x128xf32>
    %173 = arith.addf %172, %171 : vector<8x128xf32>
    %174 = arith.divf %172, %173 : vector<8x128xf32>
    %175 = vector.extract_strided_slice %169 {offsets = [0, 64], sizes = [8, 32], strides = [1, 1]} : vector<8x128xf32> to vector<8x32xf32>
    %176 = math.tanh %175 : vector<8x32xf32>
    %177 = vector.extract_strided_slice %174 {offsets = [0, 32], sizes = [8, 32], strides = [1, 1]} : vector<8x128xf32> to vector<8x32xf32>
    %178 = arith.mulf %177, %161 : vector<8x32xf32>
    %179 = vector.extract_strided_slice %174 {offsets = [0, 0], sizes = [8, 32], strides = [1, 1]} : vector<8x128xf32> to vector<8x32xf32>
    %180 = arith.mulf %179, %176 : vector<8x32xf32>
    %181 = arith.addf %178, %180 : vector<8x32xf32>
    %182 = vector.extract_strided_slice %174 {offsets = [0, 96], sizes = [8, 32], strides = [1, 1]} : vector<8x128xf32> to vector<8x32xf32>
    %183 = math.tanh %181 : vector<8x32xf32>
    %184 = arith.mulf %182, %183 : vector<8x32xf32>
    %c64_53 = arith.constant 64 : index
    %c0_54 = arith.constant 0 : index
    %185 = vector.load %arg21[%c64_53, %c0_54] : memref<128x32xf32, #tpu.memory_space<vmem>>, vector<8x32xf32>
    tpu.vector_store %arg21[%c64_53, %c0_54], %184 {strides = array<i32>} : memref<128x32xf32, #tpu.memory_space<vmem>>, vector<8x32xf32>,
    %c72 = arith.constant 72 : index
    %c0_55 = arith.constant 0 : index
    %186 = vector.load %arg20[%c72, %c0_55] : memref<128x128xf32, #tpu.memory_space<vmem>>, vector<8x128xf32>
    %187 = arith.truncf %184 : vector<8x32xf32> to vector<8x32xbf16>
    %cst_56 = arith.constant dense<0.000000e+00> : vector<8x128xf32>
    %188 = tpu.matmul %187, %7, %cst_56 {dimension_numbers = #tpu.dot_dimension_numbers<[1], [0], [0], [1], [0, 0, 1, 1], [], []>} : vector<8x32xbf16>, vector<32x128xbf16>, vector<8x128xf32> -> vector<8x128xf32>
    %189 = arith.addf %186, %188 : vector<8x128xf32>
    %190 = arith.negf %189 : vector<8x128xf32>
    %191 = math.exp %190 : vector<8x128xf32>
    %cst_57 = arith.constant 1.000000e+00 : f32
    %192 = vector.broadcast %cst_57 : f32 to vector<8x128xf32>
    %193 = arith.addf %192, %191 : vector<8x128xf32>
    %194 = arith.divf %192, %193 : vector<8x128xf32>
    %195 = vector.extract_strided_slice %189 {offsets = [0, 64], sizes = [8, 32], strides = [1, 1]} : vector<8x128xf32> to vector<8x32xf32>
    %196 = math.tanh %195 : vector<8x32xf32>
    %197 = vector.extract_strided_slice %194 {offsets = [0, 32], sizes = [8, 32], strides = [1, 1]} : vector<8x128xf32> to vector<8x32xf32>
    %198 = arith.mulf %197, %181 : vector<8x32xf32>
    %199 = vector.extract_strided_slice %194 {offsets = [0, 0], sizes = [8, 32], strides = [1, 1]} : vector<8x128xf32> to vector<8x32xf32>
    %200 = arith.mulf %199, %196 : vector<8x32xf32>
    %201 = arith.addf %198, %200 : vector<8x32xf32>
    %202 = vector.extract_strided_slice %194 {offsets = [0, 96], sizes = [8, 32], strides = [1, 1]} : vector<8x128xf32> to vector<8x32xf32>
    %203 = math.tanh %201 : vector<8x32xf32>
    %204 = arith.mulf %202, %203 : vector<8x32xf32>
    %c72_58 = arith.constant 72 : index
    %c0_59 = arith.constant 0 : index
    %205 = vector.load %arg21[%c72_58, %c0_59] : memref<128x32xf32, #tpu.memory_space<vmem>>, vector<8x32xf32>
    tpu.vector_store %arg21[%c72_58, %c0_59], %204 {strides = array<i32>} : memref<128x32xf32, #tpu.memory_space<vmem>>, vector<8x32xf32>,
    %c80 = arith.constant 80 : index
    %c0_60 = arith.constant 0 : index
    %206 = vector.load %arg20[%c80, %c0_60] : memref<128x128xf32, #tpu.memory_space<vmem>>, vector<8x128xf32>
    %207 = arith.truncf %204 : vector<8x32xf32> to vector<8x32xbf16>
    %cst_61 = arith.constant dense<0.000000e+00> : vector<8x128xf32>
    %208 = tpu.matmul %207, %7, %cst_61 {dimension_numbers = #tpu.dot_dimension_numbers<[1], [0], [0], [1], [0, 0, 1, 1], [], []>} : vector<8x32xbf16>, vector<32x128xbf16>, vector<8x128xf32> -> vector<8x128xf32>
    %209 = arith.addf %206, %208 : vector<8x128xf32>
    %210 = arith.negf %209 : vector<8x128xf32>
    %211 = math.exp %210 : vector<8x128xf32>
    %cst_62 = arith.constant 1.000000e+00 : f32
    %212 = vector.broadcast %cst_62 : f32 to vector<8x128xf32>
    %213 = arith.addf %212, %211 : vector<8x128xf32>
    %214 = arith.divf %212, %213 : vector<8x128xf32>
    %215 = vector.extract_strided_slice %209 {offsets = [0, 64], sizes = [8, 32], strides = [1, 1]} : vector<8x128xf32> to vector<8x32xf32>
    %216 = math.tanh %215 : vector<8x32xf32>
    %217 = vector.extract_strided_slice %214 {offsets = [0, 32], sizes = [8, 32], strides = [1, 1]} : vector<8x128xf32> to vector<8x32xf32>
    %218 = arith.mulf %217, %201 : vector<8x32xf32>
    %219 = vector.extract_strided_slice %214 {offsets = [0, 0], sizes = [8, 32], strides = [1, 1]} : vector<8x128xf32> to vector<8x32xf32>
    %220 = arith.mulf %219, %216 : vector<8x32xf32>
    %221 = arith.addf %218, %220 : vector<8x32xf32>
    %222 = vector.extract_strided_slice %214 {offsets = [0, 96], sizes = [8, 32], strides = [1, 1]} : vector<8x128xf32> to vector<8x32xf32>
    %223 = math.tanh %221 : vector<8x32xf32>
    %224 = arith.mulf %222, %223 : vector<8x32xf32>
    %c80_63 = arith.constant 80 : index
    %c0_64 = arith.constant 0 : index
    %225 = vector.load %arg21[%c80_63, %c0_64] : memref<128x32xf32, #tpu.memory_space<vmem>>, vector<8x32xf32>
    tpu.vector_store %arg21[%c80_63, %c0_64], %224 {strides = array<i32>} : memref<128x32xf32, #tpu.memory_space<vmem>>, vector<8x32xf32>,
    %c88 = arith.constant 88 : index
    %c0_65 = arith.constant 0 : index
    %226 = vector.load %arg20[%c88, %c0_65] : memref<128x128xf32, #tpu.memory_space<vmem>>, vector<8x128xf32>
    %227 = arith.truncf %224 : vector<8x32xf32> to vector<8x32xbf16>
    %cst_66 = arith.constant dense<0.000000e+00> : vector<8x128xf32>
    %228 = tpu.matmul %227, %7, %cst_66 {dimension_numbers = #tpu.dot_dimension_numbers<[1], [0], [0], [1], [0, 0, 1, 1], [], []>} : vector<8x32xbf16>, vector<32x128xbf16>, vector<8x128xf32> -> vector<8x128xf32>
    %229 = arith.addf %226, %228 : vector<8x128xf32>
    %230 = arith.negf %229 : vector<8x128xf32>
    %231 = math.exp %230 : vector<8x128xf32>
    %cst_67 = arith.constant 1.000000e+00 : f32
    %232 = vector.broadcast %cst_67 : f32 to vector<8x128xf32>
    %233 = arith.addf %232, %231 : vector<8x128xf32>
    %234 = arith.divf %232, %233 : vector<8x128xf32>
    %235 = vector.extract_strided_slice %229 {offsets = [0, 64], sizes = [8, 32], strides = [1, 1]} : vector<8x128xf32> to vector<8x32xf32>
    %236 = math.tanh %235 : vector<8x32xf32>
    %237 = vector.extract_strided_slice %234 {offsets = [0, 32], sizes = [8, 32], strides = [1, 1]} : vector<8x128xf32> to vector<8x32xf32>
    %238 = arith.mulf %237, %221 : vector<8x32xf32>
    %239 = vector.extract_strided_slice %234 {offsets = [0, 0], sizes = [8, 32], strides = [1, 1]} : vector<8x128xf32> to vector<8x32xf32>
    %240 = arith.mulf %239, %236 : vector<8x32xf32>
    %241 = arith.addf %238, %240 : vector<8x32xf32>
    %242 = vector.extract_strided_slice %234 {offsets = [0, 96], sizes = [8, 32], strides = [1, 1]} : vector<8x128xf32> to vector<8x32xf32>
    %243 = math.tanh %241 : vector<8x32xf32>
    %244 = arith.mulf %242, %243 : vector<8x32xf32>
    %c88_68 = arith.constant 88 : index
    %c0_69 = arith.constant 0 : index
    %245 = vector.load %arg21[%c88_68, %c0_69] : memref<128x32xf32, #tpu.memory_space<vmem>>, vector<8x32xf32>
    tpu.vector_store %arg21[%c88_68, %c0_69], %244 {strides = array<i32>} : memref<128x32xf32, #tpu.memory_space<vmem>>, vector<8x32xf32>,
    %c96 = arith.constant 96 : index
    %c0_70 = arith.constant 0 : index
    %246 = vector.load %arg20[%c96, %c0_70] : memref<128x128xf32, #tpu.memory_space<vmem>>, vector<8x128xf32>
    %247 = arith.truncf %244 : vector<8x32xf32> to vector<8x32xbf16>
    %cst_71 = arith.constant dense<0.000000e+00> : vector<8x128xf32>
    %248 = tpu.matmul %247, %7, %cst_71 {dimension_numbers = #tpu.dot_dimension_numbers<[1], [0], [0], [1], [0, 0, 1, 1], [], []>} : vector<8x32xbf16>, vector<32x128xbf16>, vector<8x128xf32> -> vector<8x128xf32>
    %249 = arith.addf %246, %248 : vector<8x128xf32>
    %250 = arith.negf %249 : vector<8x128xf32>
    %251 = math.exp %250 : vector<8x128xf32>
    %cst_72 = arith.constant 1.000000e+00 : f32
    %252 = vector.broadcast %cst_72 : f32 to vector<8x128xf32>
    %253 = arith.addf %252, %251 : vector<8x128xf32>
    %254 = arith.divf %252, %253 : vector<8x128xf32>
    %255 = vector.extract_strided_slice %249 {offsets = [0, 64], sizes = [8, 32], strides = [1, 1]} : vector<8x128xf32> to vector<8x32xf32>
    %256 = math.tanh %255 : vector<8x32xf32>
    %257 = vector.extract_strided_slice %254 {offsets = [0, 32], sizes = [8, 32], strides = [1, 1]} : vector<8x128xf32> to vector<8x32xf32>
    %258 = arith.mulf %257, %241 : vector<8x32xf32>
    %259 = vector.extract_strided_slice %254 {offsets = [0, 0], sizes = [8, 32], strides = [1, 1]} : vector<8x128xf32> to vector<8x32xf32>
    %260 = arith.mulf %259, %256 : vector<8x32xf32>
    %261 = arith.addf %258, %260 : vector<8x32xf32>
    %262 = vector.extract_strided_slice %254 {offsets = [0, 96], sizes = [8, 32], strides = [1, 1]} : vector<8x128xf32> to vector<8x32xf32>
    %263 = math.tanh %261 : vector<8x32xf32>
    %264 = arith.mulf %262, %263 : vector<8x32xf32>
    %c96_73 = arith.constant 96 : index
    %c0_74 = arith.constant 0 : index
    %265 = vector.load %arg21[%c96_73, %c0_74] : memref<128x32xf32, #tpu.memory_space<vmem>>, vector<8x32xf32>
    tpu.vector_store %arg21[%c96_73, %c0_74], %264 {strides = array<i32>} : memref<128x32xf32, #tpu.memory_space<vmem>>, vector<8x32xf32>,
    %c104 = arith.constant 104 : index
    %c0_75 = arith.constant 0 : index
    %266 = vector.load %arg20[%c104, %c0_75] : memref<128x128xf32, #tpu.memory_space<vmem>>, vector<8x128xf32>
    %267 = arith.truncf %264 : vector<8x32xf32> to vector<8x32xbf16>
    %cst_76 = arith.constant dense<0.000000e+00> : vector<8x128xf32>
    %268 = tpu.matmul %267, %7, %cst_76 {dimension_numbers = #tpu.dot_dimension_numbers<[1], [0], [0], [1], [0, 0, 1, 1], [], []>} : vector<8x32xbf16>, vector<32x128xbf16>, vector<8x128xf32> -> vector<8x128xf32>
    %269 = arith.addf %266, %268 : vector<8x128xf32>
    %270 = arith.negf %269 : vector<8x128xf32>
    %271 = math.exp %270 : vector<8x128xf32>
    %cst_77 = arith.constant 1.000000e+00 : f32
    %272 = vector.broadcast %cst_77 : f32 to vector<8x128xf32>
    %273 = arith.addf %272, %271 : vector<8x128xf32>
    %274 = arith.divf %272, %273 : vector<8x128xf32>
    %275 = vector.extract_strided_slice %269 {offsets = [0, 64], sizes = [8, 32], strides = [1, 1]} : vector<8x128xf32> to vector<8x32xf32>
    %276 = math.tanh %275 : vector<8x32xf32>
    %277 = vector.extract_strided_slice %274 {offsets = [0, 32], sizes = [8, 32], strides = [1, 1]} : vector<8x128xf32> to vector<8x32xf32>
    %278 = arith.mulf %277, %261 : vector<8x32xf32>
    %279 = vector.extract_strided_slice %274 {offsets = [0, 0], sizes = [8, 32], strides = [1, 1]} : vector<8x128xf32> to vector<8x32xf32>
    %280 = arith.mulf %279, %276 : vector<8x32xf32>
    %281 = arith.addf %278, %280 : vector<8x32xf32>
    %282 = vector.extract_strided_slice %274 {offsets = [0, 96], sizes = [8, 32], strides = [1, 1]} : vector<8x128xf32> to vector<8x32xf32>
    %283 = math.tanh %281 : vector<8x32xf32>
    %284 = arith.mulf %282, %283 : vector<8x32xf32>
    %c104_78 = arith.constant 104 : index
    %c0_79 = arith.constant 0 : index
    %285 = vector.load %arg21[%c104_78, %c0_79] : memref<128x32xf32, #tpu.memory_space<vmem>>, vector<8x32xf32>
    tpu.vector_store %arg21[%c104_78, %c0_79], %284 {strides = array<i32>} : memref<128x32xf32, #tpu.memory_space<vmem>>, vector<8x32xf32>,
    %c112 = arith.constant 112 : index
    %c0_80 = arith.constant 0 : index
    %286 = vector.load %arg20[%c112, %c0_80] : memref<128x128xf32, #tpu.memory_space<vmem>>, vector<8x128xf32>
    %287 = arith.truncf %284 : vector<8x32xf32> to vector<8x32xbf16>
    %cst_81 = arith.constant dense<0.000000e+00> : vector<8x128xf32>
    %288 = tpu.matmul %287, %7, %cst_81 {dimension_numbers = #tpu.dot_dimension_numbers<[1], [0], [0], [1], [0, 0, 1, 1], [], []>} : vector<8x32xbf16>, vector<32x128xbf16>, vector<8x128xf32> -> vector<8x128xf32>
    %289 = arith.addf %286, %288 : vector<8x128xf32>
    %290 = arith.negf %289 : vector<8x128xf32>
    %291 = math.exp %290 : vector<8x128xf32>
    %cst_82 = arith.constant 1.000000e+00 : f32
    %292 = vector.broadcast %cst_82 : f32 to vector<8x128xf32>
    %293 = arith.addf %292, %291 : vector<8x128xf32>
    %294 = arith.divf %292, %293 : vector<8x128xf32>
    %295 = vector.extract_strided_slice %289 {offsets = [0, 64], sizes = [8, 32], strides = [1, 1]} : vector<8x128xf32> to vector<8x32xf32>
    %296 = math.tanh %295 : vector<8x32xf32>
    %297 = vector.extract_strided_slice %294 {offsets = [0, 32], sizes = [8, 32], strides = [1, 1]} : vector<8x128xf32> to vector<8x32xf32>
    %298 = arith.mulf %297, %281 : vector<8x32xf32>
    %299 = vector.extract_strided_slice %294 {offsets = [0, 0], sizes = [8, 32], strides = [1, 1]} : vector<8x128xf32> to vector<8x32xf32>
    %300 = arith.mulf %299, %296 : vector<8x32xf32>
    %301 = arith.addf %298, %300 : vector<8x32xf32>
    %302 = vector.extract_strided_slice %294 {offsets = [0, 96], sizes = [8, 32], strides = [1, 1]} : vector<8x128xf32> to vector<8x32xf32>
    %303 = math.tanh %301 : vector<8x32xf32>
    %304 = arith.mulf %302, %303 : vector<8x32xf32>
    %c112_83 = arith.constant 112 : index
    %c0_84 = arith.constant 0 : index
    %305 = vector.load %arg21[%c112_83, %c0_84] : memref<128x32xf32, #tpu.memory_space<vmem>>, vector<8x32xf32>
    tpu.vector_store %arg21[%c112_83, %c0_84], %304 {strides = array<i32>} : memref<128x32xf32, #tpu.memory_space<vmem>>, vector<8x32xf32>,
    %c120 = arith.constant 120 : index
    %c0_85 = arith.constant 0 : index
    %306 = vector.load %arg20[%c120, %c0_85] : memref<128x128xf32, #tpu.memory_space<vmem>>, vector<8x128xf32>
    %307 = arith.truncf %304 : vector<8x32xf32> to vector<8x32xbf16>
    %cst_86 = arith.constant dense<0.000000e+00> : vector<8x128xf32>
    %308 = tpu.matmul %307, %7, %cst_86 {dimension_numbers = #tpu.dot_dimension_numbers<[1], [0], [0], [1], [0, 0, 1, 1], [], []>} : vector<8x32xbf16>, vector<32x128xbf16>, vector<8x128xf32> -> vector<8x128xf32>
    %309 = arith.addf %306, %308 : vector<8x128xf32>
    %310 = arith.negf %309 : vector<8x128xf32>
    %311 = math.exp %310 : vector<8x128xf32>
    %cst_87 = arith.constant 1.000000e+00 : f32
    %312 = vector.broadcast %cst_87 : f32 to vector<8x128xf32>
    %313 = arith.addf %312, %311 : vector<8x128xf32>
    %314 = arith.divf %312, %313 : vector<8x128xf32>
    %315 = vector.extract_strided_slice %309 {offsets = [0, 64], sizes = [8, 32], strides = [1, 1]} : vector<8x128xf32> to vector<8x32xf32>
    %316 = math.tanh %315 : vector<8x32xf32>
    %317 = vector.extract_strided_slice %314 {offsets = [0, 32], sizes = [8, 32], strides = [1, 1]} : vector<8x128xf32> to vector<8x32xf32>
    %318 = arith.mulf %317, %301 : vector<8x32xf32>
    %319 = vector.extract_strided_slice %314 {offsets = [0, 0], sizes = [8, 32], strides = [1, 1]} : vector<8x128xf32> to vector<8x32xf32>
    %320 = arith.mulf %319, %316 : vector<8x32xf32>
    %321 = arith.addf %318, %320 : vector<8x32xf32>
    %322 = vector.extract_strided_slice %314 {offsets = [0, 96], sizes = [8, 32], strides = [1, 1]} : vector<8x128xf32> to vector<8x32xf32>
    %323 = math.tanh %321 : vector<8x32xf32>
    %324 = arith.mulf %322, %323 : vector<8x32xf32>
    %c120_88 = arith.constant 120 : index
    %c0_89 = arith.constant 0 : index
    %325 = vector.load %arg21[%c120_88, %c0_89] : memref<128x32xf32, #tpu.memory_space<vmem>>, vector<8x32xf32>
    tpu.vector_store %arg21[%c120_88, %c0_89], %324 {strides = array<i32>} : memref<128x32xf32, #tpu.memory_space<vmem>>, vector<8x32xf32>,
    %c0_90 = arith.constant 0 : index
    %c0_91 = arith.constant 0 : index
    %326 = vector.load %arg21[%c0_90, %c0_91] : memref<128x32xf32, #tpu.memory_space<vmem>>, vector<128x32xf32>
    %327 = arith.truncf %326 : vector<128x32xf32> to vector<128x32xbf16>
    %c0_92 = arith.constant 0 : index
    %c0_93 = arith.constant 0 : index
    %328 = vector.load %arg4[%c0_92, %c0_93] : memref<32x32xbf16, #tpu.memory_space<vmem>>, vector<32x32xbf16>
    %cst_94 = arith.constant dense<0.000000e+00> : vector<128x32xf32>
    %329 = tpu.matmul %327, %328, %cst_94 {dimension_numbers = #tpu.dot_dimension_numbers<[1], [0], [0], [1], [0, 0, 1, 1], [], []>} : vector<128x32xbf16>, vector<32x32xbf16>, vector<128x32xf32> -> vector<128x32xf32>
    %330 = math.tanh %329 : vector<128x32xf32>
    %c0_95 = arith.constant 0 : index
    %c0_96 = arith.constant 0 : index
    %331 = vector.load %arg5[%c0_95, %c0_96] : memref<1x32xf32, #tpu.memory_space<vmem>>, vector<1x32xf32>
    %332 = vector.broadcast %331 : vector<1x32xf32> to vector<128x32xf32>
    %333 = arith.mulf %330, %332 : vector<128x32xf32>
    %cst_97 = arith.constant dense<0.000000e+00> : vector<128xf32>
    %334 = vector.multi_reduction <add>, %333, %cst_97 [1] : vector<128x32xf32> to vector<128xf32>
    %335 = vector.shape_cast %334 : vector<128xf32> to vector<128x1xf32>
    %cst_98 = arith.constant dense<0xFF800000> : vector<1xf32>
    %336 = vector.multi_reduction <maximumf>, %335, %cst_98 [0] : vector<128x1xf32> to vector<1xf32>
    %337 = vector.shape_cast %336 : vector<1xf32> to vector<1x1xf32>
    %338 = vector.broadcast %337 : vector<1x1xf32> to vector<128x1xf32>
    %339 = arith.subf %335, %338 : vector<128x1xf32>
    %340 = math.exp %339 : vector<128x1xf32>
    %c0_99 = arith.constant 0 : index
    %c0_100 = arith.constant 0 : index
    %341 = vector.load %arg6[%c0_99, %c0_100] : memref<16x128xf32, #tpu.memory_space<vmem>>, vector<16x128xf32>
    %342 = vector.broadcast %340 : vector<128x1xf32> to vector<128x32xf32>
    %343 = arith.mulf %326, %342 : vector<128x32xf32>
    %cst_101 = arith.constant dense<0.000000e+00> : vector<16x32xf32>
    %344 = tpu.matmul %341, %343, %cst_101 {dimension_numbers = #tpu.dot_dimension_numbers<[1], [0], [0], [1], [0, 0, 1, 1], [], []>} : vector<16x128xf32>, vector<128x32xf32>, vector<16x32xf32> -> vector<16x32xf32>
    %cst_102 = arith.constant dense<0.000000e+00> : vector<16x1xf32>
    %345 = tpu.matmul %341, %340, %cst_102 {dimension_numbers = #tpu.dot_dimension_numbers<[1], [0], [0], [1], [0, 0, 1, 1], [], []>} : vector<16x128xf32>, vector<128x1xf32>, vector<16x1xf32> -> vector<16x1xf32>
    %346 = tpu.reciprocal %345 {approx = true} : vector<16x1xf32> -> vector<16x1xf32>
    %347 = vector.broadcast %346 : vector<16x1xf32> to vector<16x32xf32>
    %348 = arith.mulf %344, %347 : vector<16x32xf32>
    %c0_103 = arith.constant 0 : index
    %c0_104 = arith.constant 0 : index
    %349 = vector.load %arg7[%c0_103, %c0_104] : memref<32x16xf32, #tpu.memory_space<vmem>>, vector<32x16xf32>
    %cst_105 = arith.constant dense<0.000000e+00> : vector<32x32xf32>
    %350 = tpu.matmul %349, %348, %cst_105 {dimension_numbers = #tpu.dot_dimension_numbers<[1], [0], [0], [1], [0, 0, 1, 1], [], []>} : vector<32x16xf32>, vector<16x32xf32>, vector<32x32xf32> -> vector<32x32xf32>
    %c0_106 = arith.constant 0 : index
    %c0_107 = arith.constant 0 : index
    %351 = vector.load %arg8[%c0_106, %c0_107] : memref<32x64xf32, #tpu.memory_space<vmem>>, vector<32x64xf32>
    %cst_108 = arith.constant dense<0.000000e+00> : vector<32x64xf32>
    %352 = tpu.matmul %350, %351, %cst_108 {dimension_numbers = #tpu.dot_dimension_numbers<[1], [0], [0], [1], [0, 0, 1, 1], [], []>} : vector<32x32xf32>, vector<32x64xf32>, vector<32x64xf32> -> vector<32x64xf32>
    %c0_109 = arith.constant 0 : index
    %c0_110 = arith.constant 0 : index
    %353 = vector.load %arg9[%c0_109, %c0_110] : memref<1x64xf32, #tpu.memory_space<vmem>>, vector<1x64xf32>
    %354 = vector.broadcast %353 : vector<1x64xf32> to vector<32x64xf32>
    %355 = arith.addf %352, %354 : vector<32x64xf32>
    %cst_111 = arith.constant 0.000000e+00 : f32
    %356 = vector.broadcast %cst_111 : f32 to vector<32x64xf32>
    %357 = arith.maximumf %355, %356 : vector<32x64xf32>
    %358 = vector.extract_strided_slice %357 {offsets = [0, 0], sizes = [16, 64], strides = [1, 1]} : vector<32x64xf32> to vector<16x64xf32>
    %359 = vector.extract_strided_slice %357 {offsets = [16, 0], sizes = [16, 64], strides = [1, 1]} : vector<32x64xf32> to vector<16x64xf32>
    %c0_112 = arith.constant 0 : index
    %c0_113 = arith.constant 0 : index
    %360 = vector.load %arg10[%c0_112, %c0_113] : memref<64x64xf32, #tpu.memory_space<vmem>>, vector<64x64xf32>
    %cst_114 = arith.constant dense<0.000000e+00> : vector<16x64xf32>
    %361 = tpu.matmul %358, %360, %cst_114 {dimension_numbers = #tpu.dot_dimension_numbers<[1], [0], [0], [1], [0, 0, 1, 1], [], []>} : vector<16x64xf32>, vector<64x64xf32>, vector<16x64xf32> -> vector<16x64xf32>
    %c0_115 = arith.constant 0 : index
    %c0_116 = arith.constant 0 : index
    %362 = vector.load %arg11[%c0_115, %c0_116] : memref<64x64xf32, #tpu.memory_space<vmem>>, vector<64x64xf32>
    %cst_117 = arith.constant dense<0.000000e+00> : vector<16x64xf32>
    %363 = tpu.matmul %359, %362, %cst_117 {dimension_numbers = #tpu.dot_dimension_numbers<[1], [0], [0], [1], [0, 0, 1, 1], [], []>} : vector<16x64xf32>, vector<64x64xf32>, vector<16x64xf32> -> vector<16x64xf32>
    %364 = arith.addf %361, %363 : vector<16x64xf32>
    %c0_118 = arith.constant 0 : index
    %c0_119 = arith.constant 0 : index
    %365 = vector.load %arg12[%c0_118, %c0_119] : memref<1x64xf32, #tpu.memory_space<vmem>>, vector<1x64xf32>
    %366 = vector.broadcast %365 : vector<1x64xf32> to vector<16x64xf32>
    %367 = arith.addf %364, %366 : vector<16x64xf32>
    %cst_120 = arith.constant 0.000000e+00 : f32
    %368 = vector.broadcast %cst_120 : f32 to vector<16x64xf32>
    %369 = arith.maximumf %367, %368 : vector<16x64xf32>
    %c0_121 = arith.constant 0 : index
    %c0_122 = arith.constant 0 : index
    %370 = vector.load %arg13[%c0_121, %c0_122] : memref<64x32xf32, #tpu.memory_space<vmem>>, vector<64x32xf32>
    %cst_123 = arith.constant dense<0.000000e+00> : vector<16x32xf32>
    %371 = tpu.matmul %369, %370, %cst_123 {dimension_numbers = #tpu.dot_dimension_numbers<[1], [0], [0], [1], [0, 0, 1, 1], [], []>} : vector<16x64xf32>, vector<64x32xf32>, vector<16x32xf32> -> vector<16x32xf32>
    %c0_124 = arith.constant 0 : index
    %c0_125 = arith.constant 0 : index
    %372 = vector.load %arg14[%c0_124, %c0_125] : memref<1x32xf32, #tpu.memory_space<vmem>>, vector<1x32xf32>
    %373 = vector.broadcast %372 : vector<1x32xf32> to vector<16x32xf32>
    %374 = arith.addf %371, %373 : vector<16x32xf32>
    %cst_126 = arith.constant 0.000000e+00 : f32
    %375 = vector.broadcast %cst_126 : f32 to vector<16x32xf32>
    %376 = arith.maximumf %374, %375 : vector<16x32xf32>
    %c0_127 = arith.constant 0 : index
    %c0_128 = arith.constant 0 : index
    %377 = vector.load %arg15[%c0_127, %c0_128] : memref<32x8xf32, #tpu.memory_space<vmem>>, vector<32x8xf32>
    %cst_129 = arith.constant dense<0.000000e+00> : vector<16x8xf32>
    %378 = tpu.matmul %376, %377, %cst_129 {dimension_numbers = #tpu.dot_dimension_numbers<[1], [0], [0], [1], [0, 0, 1, 1], [], []>} : vector<16x32xf32>, vector<32x8xf32>, vector<16x8xf32> -> vector<16x8xf32>
    %c0_130 = arith.constant 0 : index
    %c0_131 = arith.constant 0 : index
    %379 = vector.load %arg16[%c0_130, %c0_131] : memref<1x8xf32, #tpu.memory_space<vmem>>, vector<1x8xf32>
    %380 = vector.broadcast %379 : vector<1x8xf32> to vector<16x8xf32>
    %381 = arith.addf %378, %380 : vector<16x8xf32>
    %cst_132 = arith.constant 0.000000e+00 : f32
    %382 = vector.broadcast %cst_132 : f32 to vector<16x8xf32>
    %383 = arith.maximumf %381, %382 : vector<16x8xf32>
    %c0_133 = arith.constant 0 : index
    %c0_134 = arith.constant 0 : index
    %384 = vector.load %arg17[%c0_133, %c0_134] : memref<8x1xf32, #tpu.memory_space<vmem>>, vector<8x1xf32>
    %cst_135 = arith.constant dense<0.000000e+00> : vector<16x1xf32>
    %385 = tpu.matmul %383, %384, %cst_135 {dimension_numbers = #tpu.dot_dimension_numbers<[1], [0], [0], [1], [0, 0, 1, 1], [], []>} : vector<16x8xf32>, vector<8x1xf32>, vector<16x1xf32> -> vector<16x1xf32>
    %c0_136 = arith.constant 0 : index
    %c0_137 = arith.constant 0 : index
    %386 = vector.load %arg18[%c0_136, %c0_137] : memref<1x1xf32, #tpu.memory_space<vmem>>, vector<1x1xf32>
    %387 = vector.broadcast %386 : vector<1x1xf32> to vector<16x1xf32>
    %388 = arith.addf %385, %387 : vector<16x1xf32>
    %389 = arith.negf %388 : vector<16x1xf32>
    %390 = math.exp %389 : vector<16x1xf32>
    %cst_138 = arith.constant 1.000000e+00 : f32
    %391 = vector.broadcast %cst_138 : f32 to vector<16x1xf32>
    %392 = arith.addf %391, %390 : vector<16x1xf32>
    %393 = arith.divf %391, %392 : vector<16x1xf32>
    %c0_139 = arith.constant 0 : index
    %c0_140 = arith.constant 0 : index
    %394 = vector.load %arg19[%c0_139, %c0_140] : memref<16x1xf32, #tpu.memory_space<vmem>>, vector<16x1xf32>
    tpu.vector_store %arg19[%c0_139, %c0_140], %393 {strides = array<i32>} : memref<16x1xf32, #tpu.memory_space<vmem>>, vector<16x1xf32>,
    return
  }
}

</mosaic_0001>

<bundles_post_ra>
// kernel: squeeze.5
= control target key start
LH: loop header
LB: loop body
LE: loop exit
PB: predicated region body
PF: predicated region fallthrough
CT: control target
= control target key end

     0   :  { %s50_s8 = smov 126   ;;  %s51_s9 = smov 118   ;;  %vm7_vm0 = vcmask 15360   ;;  %s85_s0 = inlined_call_operand.vmem [shape: f32[12], index: 0, kind: input, shape index: {}]   ;;  %s86_s1 = inlined_call_operand.vmem [shape: f32[6,2], index: 1, kind: output, shape index: {}]  }
   0x1   :  { %v4_v0 = vld [vmem:[%s85_s0] sm:$0x1]  ;;  %s49_s0 = smov 122   ;;  %s52_s10 = smov 120  }
   0x2   :  { %5 = vst [vmem:[#allocation0] sm:$0x1] %v4_v0  ;;  %s53_s11 = smov 124  }
   0x9   :  { %v21_v1 = vld [vmem:[#allocation0] sm:$0x1]  }
   0xa   :  { %v9_v2 = vld [vmem:[#allocation0] sm:$0x1]   ;;  %22 = vrot.lane.b32.xlu1 %v21_v1, %s49_s0 }
   0xb   :  { %10 = vrot.lane.b32.xlu0 %v9_v2, %s50_s8  ;;  %v33_v3 = vld [vmem:[#allocation0] sm:$0x1]  }
   0xc   :  { %34 = vrot.lane.b32.xlu2 %v33_v3, %s51_s9  ;;  %v27_v4 = vld [vmem:[#allocation0] sm:$0x1]  }
   0xd   :  { %v15_v5 = vld [vmem:[#allocation0] sm:$0x1]  }
   0xe   :  { %v6_v6 = vld [vmem:[#allocation0] sm:$0x1]  }
   0xf   :  { %8 = vst.msk [vmem:[%s86_s1] sm:$0x1] %vm7_vm0, %v6_v6  }
  0x12   :  { %28 = vrot.lane.b32.xlu1 %v27_v4, %s52_s10 }
  0x13   :  { %16 = vrot.lane.b32.xlu0 %v15_v5, %s53_s11 }
  0x66   :  { %v35_v7 = vpop.permute.xlu2 %34  }
  0x67   :  { %43 = vst.msk [vmem:[%s86_s1 + $0x5] sm:$0x1] %vm7_vm0, %v35_v7  }
  0x7c   :  { %v23_v8 = vpop.permute.xlu1 %22  }
  0x7d   :  { %v11_v9 = vpop.permute.xlu0 %10   ;;  %41 = vst.msk [vmem:[%s86_s1 + $0x3] sm:$0x1] %vm7_vm0, %v23_v8  }
  0x7e   :  { %39 = vst.msk [vmem:[%s86_s1 + $0x1] sm:$0x1] %vm7_vm0, %v11_v9  }
  0x84   :  { %v29_v10 = vpop.permute.xlu1 %28  }
  0x85   :  { %v17_v11 = vpop.permute.xlu0 %16   ;;  %42 = vst.msk [vmem:[%s86_s1 + $0x4] sm:$0x1] %vm7_vm0, %v29_v10  }
  0x86   :  { %40 = vst.msk [vmem:[%s86_s1 + $0x2] sm:$0x1] %vm7_vm0, %v17_v11  }

// kernel: atlstm_forward.1
= control target key start
LH: loop header
LB: loop body
LE: loop exit
PB: predicated region body
PF: predicated region fallthrough
CT: control target
= control target key end

     0   :  { %vm151_vm0 = vcmask 1043456   ;;  %vm126_vm1 = vcmask 64512   ;;  %s2274_s25 = smov 64   ;;  %vm266_vm6 = vcmask 261120   ;;  %s2981_s1 = inlined_call_operand.vmem [shape: bf16[8,128], index: 1, kind: input, shape index: {}]   ;;  %s2982_s0 = inlined_call_operand.vmem [shape: bf16[128,8], index: 0, kind: input, shape index: {}]   ;;  %s2983_s3 = inlined_call_operand.vmem [shape: f32[1,128], index: 3, kind: input, shape index: {}]   ;;  %s2984_s2 = inlined_call_operand.vmem [shape: bf16[32,128], index: 2, kind: input, shape index: {}]   ;;  %s2985_s4 = inlined_call_operand.vmem [shape: bf16[32,32], index: 4, kind: input, shape index: {}]   ;;  %s2986_s5 = inlined_call_operand.vmem [shape: f32[1,32], index: 5, kind: input, shape index: {}]   ;;  %s2987_s6 = inlined_call_operand.vmem [shape: f32[16,128], index: 6, kind: input, shape index: {}]   ;;  %s2988_s8 = inlined_call_operand.vmem [shape: f32[32,64], index: 8, kind: input, shape index: {}]   ;;  %s2989_s7 = inlined_call_operand.vmem [shape: f32[32,16], index: 7, kind: input, shape index: {}]   ;;  %s2990_s9 = inlined_call_operand.vmem [shape: f32[1,64], index: 9, kind: input, shape index: {}]   ;;  %s2991_s11 = inlined_call_operand.vmem [shape: f32[64,64], index: 11, kind: input, shape index: {}]   ;;  %s2992_s10 = inlined_call_operand.vmem [shape: f32[64,64], index: 10, kind: input, shape index: {}]   ;;  %s2993_s12 = inlined_call_operand.vmem [shape: f32[1,64], index: 12, kind: input, shape index: {}]   ;;  %s2994_s14 = inlined_call_operand.vmem [shape: f32[1,32], index: 14, kind: input, shape index: {}]   ;;  %s2995_s13 = inlined_call_operand.vmem [shape: f32[64,32], index: 13, kind: input, shape index: {}]   ;;  %s2996_s15 = inlined_call_operand.vmem [shape: f32[32,8], index: 15, kind: input, shape index: {}]   ;;  %s2997_s16 = inlined_call_operand.vmem [shape: f32[1,8], index: 16, kind: input, shape index: {}]   ;;  %s2998_s17 = inlined_call_operand.vmem [shape: f32[8,1], index: 17, kind: input, shape index: {}]   ;;  %s2999_s18 = inlined_call_operand.<no memory space> [shape: f32[1,1], index: 18, kind: input, shape index: {}]   ;;  %s3000_s19 = inlined_call_operand.vmem [shape: f32[16,1], index: 19, kind: output, shape index: {}]  }
   0x1   :  { %3004 = sst [smem:[#allocation5_spill]] %s2981_s1 }
   0x2   :  { %3005 = sst [smem:[#allocation6_spill]] %s2982_s0 }
   0x3   :  { %3006 = sst [smem:[#allocation7_spill]] %s2983_s3 }
   0x4   :  { %3007 = sst [smem:[#allocation8_spill]] %s2984_s2  ;;  %s2275_s2 = smov 32  }
   0x5   :  { %s3008_s20 = sld [smem:[#allocation5_spill]] }
   0x6   :  { %s3009_s22 = sld [smem:[#allocation6_spill]] }
   0x7   :  { %s3010_s24 = sld [smem:[#allocation7_spill]] }
   0x8   :  { %s3011_s28 = sld [smem:[#allocation8_spill]] }
   0xb   :  { %v81_v0 = vld [vmem:[%s3008_s20] sm:$0xf] }
   0xc   :  { %v153_v1 = vsel %vm151_vm0, %v81_v0, 0  ;;  %v2042_v2 = vld [vmem:[%s3009_s22] sm:$0xff]  ;;  %v2043_v57 = vld [vmem:[%s3009_s22 + $0x8] sm:$0xff] }
   0xd   :  { %162 = vmatpush.bf16.msra.mxu0 %v153_v1  ;;  %v2387_v3 = vld [vmem:[%s3010_s24] ss:$0 sm:$0xff] }
   0xe   :  { %v2396_v26 = vld [vmem:[%s3011_s28 + $0x8] sm:$0xff]  ;;  %v2402_v27 = vld [vmem:[%s3011_s28] sm:$0xff] }
   0xf   :  { %294 = vmatpush.bf16.msra.mxu1 %v2396_v26  ;;  %358 = vmatpush.bf16.msra.mxu2 %v2396_v26 }
  0x10   :  { %1959 = vmatmul.msk.bf16.vlgmr.msra.gmra.mxu0 %vm126_vm1, %v2042_v2  ;;  %422 = vmatpush.bf16.msra.mxu3 %v2396_v26 }
  0x13   :  { %295 = vmatpush.bf16.msra.mxu1 %v2402_v27  ;;  %359 = vmatpush.bf16.msra.mxu2 %v2402_v27 }
  0x14   :  { %423 = vmatpush.bf16.msra.mxu3 %v2402_v27 }
  0x17   :  { %486 = vmatpush.bf16.msrb.mxu1 %v2396_v26  ;;  %550 = vmatpush.bf16.msrb.mxu2 %v2396_v26 }
  0x18   :  { %614 = vmatpush.bf16.msrb.mxu3 %v2396_v26 }
  0x1b   :  { %487 = vmatpush.bf16.msrb.mxu1 %v2402_v27  ;;  %551 = vmatpush.bf16.msrb.mxu2 %v2402_v27 }
  0x1c   :  { %615 = vmatpush.bf16.msrb.mxu3 %v2402_v27 }
  0x20   :  { %1960 = vmatmul.msk.bf16.gmra.mxu0 %vm126_vm1, %v2043_v57 }
  0x8d   :  { %v164_v4 = vpop.f32.mrf.mxu0 }
  0x8e   :  { %v165_v5 = vadd.f32 %v2387_v3, %v164_v4 }
  0x90   :  { %2069 = vtanh.f32 %v165_v5  ;;  %v1967_v7 = vmul.f32 -1.442695, %v165_v5 }
  0x92   :  { %2071 = vpow2.f32 %v1967_v7 }
  0x95   :  { %v166_v32 = vpop.f32.mrf.mxu0 }
  0x96   :  { %v2070_v6 = vpop.eup %2069  ;;  %v167_v33 = vadd.f32 %v2387_v3, %v166_v32 }
  0x97   :  { %247 = vrot.lane.b32.xlu0 %v2070_v6, %s2274_s25 }
  0x98   :  { %v2072_v8 = vpop.eup %2071 }
  0x99   :  { %v228_v9 = vadd.f32 1.0, %v2072_v8 }
  0x9b   :  { %2073 = vrcp.f32 %v228_v9  ;;  %v240_v15 = vand.u32 2147483648, %v228_v9  ;;  %vm234_vm3 = vweird.f32 %v228_v9  ;;  %v238_v16 = vand.u32 2147483647, %v228_v9 }
  0x9d   :  { %v241_v18 = vor.u32 1.1754944e-38, %v240_v15  ;;  %vm239_vm5 = vcmp.eq.f32.partialorder %v238_v16, 8.507059e+37  ;;  %v169_v62 = vpop.f32.mrf.mxu0 }
  0x9e   :  { %v170_v63 = vadd.f32 %v2387_v3, %v169_v62 }
  0xa1   :  { %v2074_v10 = vpop.eup %2073 }
  0xa2   :  { %v230_v11 = vmul.f32 %v2074_v10, %v228_v9  ;;  %vm235_vm2 = vweird.f32 %v2074_v10 }
  0xa3   :  { %vm236_vm4 = vmor %vm234_vm3, %vm235_vm2 }
  0xa4   :  { %v231_v12 = vsub.f32 1.0, %v230_v11 }
  0xa6   :  { %v232_v13 = vmul.f32 %v2074_v10, %v231_v12 }
  0xa8   :  { %v233_v14 = vadd.f32 %v2074_v10, %v232_v13 }
  0xaa   :  { %v237_v17 = vsel %vm236_vm4, %v2074_v10, %v233_v14 }
  0xab   :  { %v242_v20 = vsel %vm239_vm5, %v241_v18, %v237_v17 }
  0xac   :  { %v245_v22 = vmul.f32 0.0, %v242_v20 }
 0x109   :  { %v248_v19 = vpop.permute.xlu0 %247 }
 0x10a   :  { %v250_v21 = vmul.f32 %v248_v19, %v242_v20 }
 0x10c   :  { %252 = vrot.lane.b32.xlu0 %v250_v21, %s2275_s2 }
 0x17e   :  { %v253_v23 = vpop.permute.xlu0 %252 }
 0x17f   :  { %v255_v24 = vadd.f32 %v253_v23, %v245_v22 }
 0x181   :  { %2075 = vtanh.f32 %v255_v24 }
 0x187   :  { %v2076_v25 = vpop.eup %2075 }
 0x188   :  { %258 = vrot.lane.b32.xlu1 %v2076_v25, %s2274_s25 }
 0x1fa   :  { %v259_v28 = vpop.permute.xlu1 %258 }
 0x1fb   :  { %v2415_v29 = vmul.f32 %v259_v28, %v242_v20 }
 0x1fd   :  { %v269_v30 = vpack.c.bf16 %v2415_v29, %v2415_v29 }
 0x1ff   :  { %271 = vrot.lane.b32.xlu1 %v269_v30, %s2275_s2 }
 0x271   :  { %v272_v31 = vpop.permute.xlu1 %271 }
 0x272   :  { %1976 = vmatmul.msk.bf16.vlgmr.msra.gmra.mxu1 %vm266_vm6, %v272_v31  ;;  %v171_v31 = vpop.f32.mrf.mxu0 }
 0x273   :  { %678 = vmatpush.bf16.msra.mxu1 %v2396_v26  ;;  %v172_v32 = vadd.f32 %v2387_v3, %v171_v31 }
 0x277   :  { %679 = vmatpush.bf16.msra.mxu1 %v2402_v27 }
 0x2ef   :  { %v297_v34 = vpop.f32.mrf.mxu1 }
 0x2f0   :  { %v301_v35 = vadd.f32 %v297_v34, %v167_v33 }
 0x2f2   :  { %2077 = vtanh.f32 %v301_v35  ;;  %v1977_v38 = vmul.f32 -1.442695, %v301_v35 }
 0x2f4   :  { %2079 = vpow2.f32 %v1977_v38 }
 0x2f7   :  { %v299_v36 = vpop.f32.mrf.mxu1 }
 0x2f8   :  { %v2078_v37 = vpop.eup %2077 }
 0x2f9   :  { %324 = vrot.lane.b32.xlu2 %v2078_v37, %s2274_s25 }
 0x2fa   :  { %v2080_v39 = vpop.eup %2079 }
 0x2fb   :  { %v305_v40 = vadd.f32 1.0, %v2080_v39 }
 0x2fd   :  { %2081 = vrcp.f32 %v305_v40  ;;  %v317_v46 = vand.u32 2147483648, %v305_v40  ;;  %vm311_vm8 = vweird.f32 %v305_v40  ;;  %v315_v47 = vand.u32 2147483647, %v305_v40 }
 0x2ff   :  { %v318_v49 = vor.u32 1.1754944e-38, %v317_v46  ;;  %vm316_vm10 = vcmp.eq.f32.partialorder %v315_v47, 8.507059e+37 }
 0x303   :  { %v2082_v41 = vpop.eup %2081 }
 0x304   :  { %v307_v42 = vmul.f32 %v2082_v41, %v305_v40  ;;  %vm312_vm7 = vweird.f32 %v2082_v41 }
 0x305   :  { %vm313_vm9 = vmor %vm311_vm8, %vm312_vm7 }
 0x306   :  { %v308_v43 = vsub.f32 1.0, %v307_v42 }
 0x308   :  { %v309_v44 = vmul.f32 %v2082_v41, %v308_v43 }
 0x30a   :  { %v310_v45 = vadd.f32 %v2082_v41, %v309_v44 }
 0x30c   :  { %v314_v48 = vsel %vm313_vm9, %v2082_v41, %v310_v45 }
 0x30d   :  { %v319_v51 = vsel %vm316_vm10, %v318_v49, %v314_v48 }
 0x30e   :  { %v322_v53 = vmul.f32 %v319_v51, %v255_v24 }
 0x353   :  { %v325_v50 = vpop.permute.xlu2 %324 }
 0x354   :  { %v327_v52 = vmul.f32 %v325_v50, %v319_v51 }
 0x356   :  { %329 = vrot.lane.b32.xlu2 %v327_v52, %s2275_s2 }
 0x3b0   :  { %v330_v54 = vpop.permute.xlu2 %329 }
 0x3b1   :  { %v332_v55 = vadd.f32 %v330_v54, %v322_v53 }
 0x3b3   :  { %2083 = vtanh.f32 %v332_v55 }
 0x3b9   :  { %v2084_v56 = vpop.eup %2083 }
 0x3ba   :  { %335 = vrot.lane.b32.xlu0 %v2084_v56, %s2274_s25  ;;  %v2044_v56 = vld [vmem:[%s3009_s22 + $0x10] sm:$0xff] }
 0x3bb   :  { %1961 = vmatmul.msk.bf16.gmra.mxu0 %vm126_vm1, %v2044_v56 }
 0x42c   :  { %v336_v58 = vpop.permute.xlu0 %335 }
 0x42d   :  { %v2431_v59 = vmul.f32 %v336_v58, %v319_v51 }
 0x42f   :  { %v345_v60 = vpack.c.bf16 %v2431_v59, %v2431_v59 }
 0x431   :  { %347 = vrot.lane.b32.xlu1 %v345_v60, %s2275_s2 }
 0x438   :  { %v174_v62 = vpop.f32.mrf.mxu0 }
 0x4a3   :  { %v348_v61 = vpop.permute.xlu1 %347 }
 0x4a4   :  { %1978 = vmatmul.msk.bf16.vlgmr.msra.gmra.mxu2 %vm266_vm6, %v348_v61 }
 0x4a5   :  { %742 = vmatpush.bf16.msra.mxu2 %v2396_v26 }
 0x4a9   :  { %743 = vmatpush.bf16.msra.mxu2 %v2402_v27 }
 0x527   :  { %v361_v0 = vpop.f32.mrf.mxu2 }
 0x528   :  { %v365_v1 = vadd.f32 %v361_v0, %v170_v63  ;;  %v175_v63 = vadd.f32 %v2387_v3, %v174_v62 }
 0x52a   :  { %2085 = vtanh.f32 %v365_v1  ;;  %v1979_v5 = vmul.f32 -1.442695, %v365_v1 }
 0x52c   :  { %2087 = vpow2.f32 %v1979_v5 }
 0x52f   :  { %v363_v2 = vpop.f32.mrf.mxu2 }
 0x530   :  { %v2086_v4 = vpop.eup %2085 }
 0x531   :  { %388 = vrot.lane.b32.xlu2 %v2086_v4, %s2274_s25 }
 0x532   :  { %v2088_v6 = vpop.eup %2087 }
 0x533   :  { %v369_v7 = vadd.f32 1.0, %v2088_v6 }
 0x535   :  { %2089 = vrcp.f32 %v369_v7  ;;  %v381_v13 = vand.u32 2147483648, %v369_v7  ;;  %vm375_vm12 = vweird.f32 %v369_v7  ;;  %v379_v14 = vand.u32 2147483647, %v369_v7 }
 0x537   :  { %v382_v16 = vor.u32 1.1754944e-38, %v381_v13  ;;  %vm380_vm14 = vcmp.eq.f32.partialorder %v379_v14, 8.507059e+37 }
 0x53b   :  { %v2090_v8 = vpop.eup %2089 }
 0x53c   :  { %v371_v9 = vmul.f32 %v2090_v8, %v369_v7  ;;  %vm376_vm11 = vweird.f32 %v2090_v8 }
 0x53d   :  { %vm377_vm13 = vmor %vm375_vm12, %vm376_vm11 }
 0x53e   :  { %v372_v10 = vsub.f32 1.0, %v371_v9 }
 0x540   :  { %v373_v11 = vmul.f32 %v2090_v8, %v372_v10 }
 0x542   :  { %v374_v12 = vadd.f32 %v2090_v8, %v373_v11 }
 0x544   :  { %v378_v15 = vsel %vm377_vm13, %v2090_v8, %v374_v12 }
 0x545   :  { %v383_v18 = vsel %vm380_vm14, %v382_v16, %v378_v15 }
 0x546   :  { %v386_v20 = vmul.f32 %v383_v18, %v332_v55 }
 0x58b   :  { %v389_v17 = vpop.permute.xlu2 %388 }
 0x58c   :  { %v391_v19 = vmul.f32 %v389_v17, %v383_v18 }
 0x58e   :  { %393 = vrot.lane.b32.xlu0 %v391_v19, %s2275_s2 }
 0x600   :  { %v394_v21 = vpop.permute.xlu0 %393 }
 0x601   :  { %v396_v22 = vadd.f32 %v394_v21, %v386_v20 }
 0x603   :  { %2091 = vtanh.f32 %v396_v22 }
 0x609   :  { %v2092_v23 = vpop.eup %2091 }
 0x60a   :  { %399 = vrot.lane.b32.xlu1 %v2092_v23, %s2274_s25 }
 0x67c   :  { %v400_v24 = vpop.permute.xlu1 %399 }
 0x67d   :  { %v2443_v25 = vmul.f32 %v400_v24, %v383_v18 }
 0x67f   :  { %v409_v28 = vpack.c.bf16 %v2443_v25, %v2443_v25 }
 0x681   :  { %411 = vrot.lane.b32.xlu2 %v409_v28, %s2275_s2 }
 0x6db   :  { %v412_v30 = vpop.permute.xlu2 %411 }
 0x6dc   :  { %1980 = vmatmul.msk.bf16.vlgmr.msra.gmra.mxu3 %vm266_vm6, %v412_v30 }
 0x6dd   :  { %806 = vmatpush.bf16.msra.mxu3 %v2396_v26 }
 0x6e1   :  { %807 = vmatpush.bf16.msra.mxu3 %v2402_v27 }
 0x75f   :  { %v425_v33 = vpop.f32.mrf.mxu3 }
 0x760   :  { %v429_v34 = vadd.f32 %v425_v33, %v172_v32  ;;  %v176_v32 = vpop.f32.mrf.mxu0 }
 0x761   :  { %v177_v33 = vadd.f32 %v2387_v3, %v176_v32 }
 0x762   :  { %2093 = vtanh.f32 %v429_v34  ;;  %v1981_v37 = vmul.f32 -1.442695, %v429_v34 }
 0x764   :  { %2095 = vpow2.f32 %v1981_v37 }
 0x767   :  { %v427_v35 = vpop.f32.mrf.mxu3 }
 0x768   :  { %v2094_v36 = vpop.eup %2093 }
 0x769   :  { %452 = vrot.lane.b32.xlu0 %v2094_v36, %s2274_s25 }
 0x76a   :  { %v2096_v38 = vpop.eup %2095 }
 0x76b   :  { %v433_v39 = vadd.f32 1.0, %v2096_v38 }
 0x76d   :  { %2097 = vrcp.f32 %v433_v39  ;;  %v445_v45 = vand.u32 2147483648, %v433_v39  ;;  %vm439_vm0 = vweird.f32 %v433_v39  ;;  %v443_v46 = vand.u32 2147483647, %v433_v39 }
 0x76f   :  { %v446_v48 = vor.u32 1.1754944e-38, %v445_v45  ;;  %vm444_vm3 = vcmp.eq.f32.partialorder %v443_v46, 8.507059e+37 }
 0x773   :  { %v2098_v40 = vpop.eup %2097 }
 0x774   :  { %v435_v41 = vmul.f32 %v2098_v40, %v433_v39  ;;  %vm440_vm15 = vweird.f32 %v2098_v40 }
 0x775   :  { %vm441_vm2 = vmor %vm439_vm0, %vm440_vm15 }
 0x776   :  { %v436_v42 = vsub.f32 1.0, %v435_v41 }
 0x778   :  { %v437_v43 = vmul.f32 %v2098_v40, %v436_v42 }
 0x77a   :  { %v438_v44 = vadd.f32 %v2098_v40, %v437_v43 }
 0x77c   :  { %v442_v47 = vsel %vm441_vm2, %v2098_v40, %v438_v44 }
 0x77d   :  { %v447_v50 = vsel %vm444_vm3, %v446_v48, %v442_v47 }
 0x77e   :  { %v450_v52 = vmul.f32 %v447_v50, %v396_v22 }
 0x7db   :  { %v453_v49 = vpop.permute.xlu0 %452 }
 0x7dc   :  { %v455_v51 = vmul.f32 %v453_v49, %v447_v50 }
 0x7de   :  { %457 = vrot.lane.b32.xlu1 %v455_v51, %s2275_s2 }
 0x850   :  { %v458_v53 = vpop.permute.xlu1 %457 }
 0x851   :  { %v460_v54 = vadd.f32 %v458_v53, %v450_v52 }
 0x853   :  { %2099 = vtanh.f32 %v460_v54 }
 0x859   :  { %v2100_v55 = vpop.eup %2099 }
 0x85a   :  { %463 = vrot.lane.b32.xlu2 %v2100_v55, %s2274_s25 }
 0x8b4   :  { %v464_v57 = vpop.permute.xlu2 %463 }
 0x8b5   :  { %v2459_v58 = vmul.f32 %v464_v57, %v447_v50  ;;  %v2045_v57 = vld [vmem:[%s3009_s22 + $0x18] sm:$0xff] }
 0x8b6   :  { %1962 = vmatmul.msk.bf16.gmra.mxu0 %vm126_vm1, %v2045_v57 }
 0x8b7   :  { %v473_v60 = vpack.c.bf16 %v2459_v58, %v2459_v58 }
 0x8b9   :  { %475 = vrot.lane.b32.xlu0 %v473_v60, %s2275_s2 }
 0x92b   :  { %v476_v61 = vpop.permute.xlu0 %475 }
 0x92c   :  { %1982 = vmatmul.msk.bf16.vlgmr.msrb.gmra.mxu1 %vm266_vm6, %v476_v61 }
 0x92d   :  { %870 = vmatpush.bf16.msrb.mxu1 %v2396_v26 }
 0x931   :  { %871 = vmatpush.bf16.msrb.mxu1 %v2402_v27 }
 0x9a9   :  { %v489_v0 = vpop.f32.mrf.mxu1 }
 0x9aa   :  { %v493_v1 = vadd.f32 %v489_v0, %v175_v63  ;;  %v179_v0 = vpop.f32.mrf.mxu0 }
 0x9ac   :  { %2101 = vtanh.f32 %v493_v1  ;;  %v1983_v5 = vmul.f32 -1.442695, %v493_v1  ;;  %v180_v1 = vadd.f32 %v2387_v3, %v179_v0 }
 0x9ae   :  { %2103 = vpow2.f32 %v1983_v5 }
 0x9b1   :  { %v491_v2 = vpop.f32.mrf.mxu1 }
 0x9b2   :  { %v2102_v4 = vpop.eup %2101 }
 0x9b3   :  { %516 = vrot.lane.b32.xlu1 %v2102_v4, %s2274_s25 }
 0x9b4   :  { %v2104_v6 = vpop.eup %2103 }
 0x9b5   :  { %v497_v7 = vadd.f32 1.0, %v2104_v6 }
 0x9b7   :  { %2105 = vrcp.f32 %v497_v7  ;;  %v509_v13 = vand.u32 2147483648, %v497_v7  ;;  %vm503_vm5 = vweird.f32 %v497_v7  ;;  %v507_v14 = vand.u32 2147483647, %v497_v7 }
 0x9b9   :  { %v510_v16 = vor.u32 1.1754944e-38, %v509_v13  ;;  %vm508_vm8 = vcmp.eq.f32.partialorder %v507_v14, 8.507059e+37 }
 0x9bd   :  { %v2106_v8 = vpop.eup %2105 }
 0x9be   :  { %v499_v9 = vmul.f32 %v2106_v8, %v497_v7  ;;  %vm504_vm4 = vweird.f32 %v2106_v8 }
 0x9bf   :  { %vm505_vm7 = vmor %vm503_vm5, %vm504_vm4 }
 0x9c0   :  { %v500_v10 = vsub.f32 1.0, %v499_v9 }
 0x9c2   :  { %v501_v11 = vmul.f32 %v2106_v8, %v500_v10 }
 0x9c4   :  { %v502_v12 = vadd.f32 %v2106_v8, %v501_v11 }
 0x9c6   :  { %v506_v15 = vsel %vm505_vm7, %v2106_v8, %v502_v12 }
 0x9c7   :  { %v511_v18 = vsel %vm508_vm8, %v510_v16, %v506_v15 }
 0x9c8   :  { %v514_v20 = vmul.f32 %v511_v18, %v460_v54 }
 0xa25   :  { %v517_v17 = vpop.permute.xlu1 %516 }
 0xa26   :  { %v519_v19 = vmul.f32 %v517_v17, %v511_v18 }
 0xa28   :  { %521 = vrot.lane.b32.xlu2 %v519_v19, %s2275_s2 }
 0xa82   :  { %v522_v21 = vpop.permute.xlu2 %521 }
 0xa83   :  { %v524_v22 = vadd.f32 %v522_v21, %v514_v20 }
 0xa85   :  { %2107 = vtanh.f32 %v524_v22 }
 0xa8b   :  { %v2108_v23 = vpop.eup %2107 }
 0xa8c   :  { %527 = vrot.lane.b32.xlu0 %v2108_v23, %s2274_s25 }
 0xafe   :  { %v528_v24 = vpop.permute.xlu0 %527 }
 0xaff   :  { %v2471_v28 = vmul.f32 %v528_v24, %v511_v18 }
 0xb01   :  { %v537_v30 = vpack.c.bf16 %v2471_v28, %v2471_v28 }
 0xb03   :  { %539 = vrot.lane.b32.xlu1 %v537_v30, %s2275_s2 }
 0xb75   :  { %v540_v31 = vpop.permute.xlu1 %539 }
 0xb76   :  { %1984 = vmatmul.msk.bf16.vlgmr.msrb.gmra.mxu2 %vm266_vm6, %v540_v31 }
 0xb77   :  { %934 = vmatpush.bf16.msrb.mxu2 %v2396_v26 }
 0xb7b   :  { %935 = vmatpush.bf16.msrb.mxu2 %v2402_v27 }
 0xbf9   :  { %v553_v34 = vpop.f32.mrf.mxu2 }
 0xbfa   :  { %v557_v35 = vadd.f32 %v553_v34, %v177_v33 }
 0xbfc   :  { %2109 = vtanh.f32 %v557_v35  ;;  %v1985_v38 = vmul.f32 -1.442695, %v557_v35  ;;  %v181_v35 = vpop.f32.mrf.mxu0 }
 0xbfe   :  { %2111 = vpow2.f32 %v1985_v38 }
 0xc01   :  { %v555_v36 = vpop.f32.mrf.mxu2 }
 0xc02   :  { %v2110_v37 = vpop.eup %2109  ;;  %v182_v36 = vadd.f32 %v2387_v3, %v181_v35 }
 0xc03   :  { %580 = vrot.lane.b32.xlu2 %v2110_v37, %s2274_s25 }
 0xc04   :  { %v2112_v39 = vpop.eup %2111 }
 0xc05   :  { %v561_v40 = vadd.f32 1.0, %v2112_v39 }
 0xc07   :  { %2113 = vrcp.f32 %v561_v40  ;;  %v573_v46 = vand.u32 2147483648, %v561_v40  ;;  %vm567_vm10 = vweird.f32 %v561_v40  ;;  %v571_v47 = vand.u32 2147483647, %v561_v40 }
 0xc09   :  { %v574_v49 = vor.u32 1.1754944e-38, %v573_v46  ;;  %vm572_vm12 = vcmp.eq.f32.partialorder %v571_v47, 8.507059e+37 }
 0xc0d   :  { %v2114_v41 = vpop.eup %2113 }
 0xc0e   :  { %v563_v42 = vmul.f32 %v2114_v41, %v561_v40  ;;  %vm568_vm9 = vweird.f32 %v2114_v41 }
 0xc0f   :  { %vm569_vm11 = vmor %vm567_vm10, %vm568_vm9 }
 0xc10   :  { %v564_v43 = vsub.f32 1.0, %v563_v42 }
 0xc12   :  { %v565_v44 = vmul.f32 %v2114_v41, %v564_v43 }
 0xc14   :  { %v566_v45 = vadd.f32 %v2114_v41, %v565_v44 }
 0xc16   :  { %v570_v48 = vsel %vm569_vm11, %v2114_v41, %v566_v45 }
 0xc17   :  { %v575_v51 = vsel %vm572_vm12, %v574_v49, %v570_v48 }
 0xc18   :  { %v578_v53 = vmul.f32 %v575_v51, %v524_v22 }
 0xc5d   :  { %v581_v50 = vpop.permute.xlu2 %580 }
 0xc5e   :  { %v583_v52 = vmul.f32 %v581_v50, %v575_v51 }
 0xc60   :  { %585 = vrot.lane.b32.xlu0 %v583_v52, %s2275_s2 }
 0xcd2   :  { %v586_v54 = vpop.permute.xlu0 %585 }
 0xcd3   :  { %v588_v55 = vadd.f32 %v586_v54, %v578_v53 }
 0xcd5   :  { %2115 = vtanh.f32 %v588_v55 }
 0xcdb   :  { %v2116_v56 = vpop.eup %2115 }
 0xcdc   :  { %591 = vrot.lane.b32.xlu1 %v2116_v56, %s2274_s25 }
 0xd4e   :  { %v592_v60 = vpop.permute.xlu1 %591 }
 0xd4f   :  { %v2487_v61 = vmul.f32 %v592_v60, %v575_v51 }
 0xd51   :  { %v601_v62 = vpack.c.bf16 %v2487_v61, %v2487_v61 }
 0xd53   :  { %603 = vrot.lane.b32.xlu2 %v601_v62, %s2275_s2 }
 0xdad   :  { %v604_v63 = vpop.permute.xlu2 %603 }
 0xdae   :  { %1986 = vmatmul.msk.bf16.vlgmr.msrb.gmra.mxu3 %vm266_vm6, %v604_v63  ;;  %v2046_v63 = vld [vmem:[%s3009_s22 + $0x20] sm:$0xff] }
 0xdaf   :  { %998 = vmatpush.bf16.msrb.mxu3 %v2396_v26  ;;  %1963 = vmatmul.msk.bf16.gmra.mxu0 %vm126_vm1, %v2046_v63 }
 0xdb3   :  { %999 = vmatpush.bf16.msrb.mxu3 %v2402_v27 }
 0xe31   :  { %v617_v2 = vpop.f32.mrf.mxu3 }
 0xe32   :  { %v621_v4 = vadd.f32 %v617_v2, %v180_v1 }
 0xe34   :  { %2117 = vtanh.f32 %v621_v4  ;;  %v1987_v7 = vmul.f32 -1.442695, %v621_v4 }
 0xe36   :  { %2119 = vpow2.f32 %v1987_v7 }
 0xe39   :  { %v619_v5 = vpop.f32.mrf.mxu3 }
 0xe3a   :  { %v2118_v6 = vpop.eup %2117  ;;  %v184_v5 = vpop.f32.mrf.mxu0 }
 0xe3b   :  { %644 = vrot.lane.b32.xlu0 %v2118_v6, %s2274_s25  ;;  %v185_v6 = vadd.f32 %v2387_v3, %v184_v5 }
 0xe3c   :  { %v2120_v8 = vpop.eup %2119 }
 0xe3d   :  { %v625_v9 = vadd.f32 1.0, %v2120_v8 }
 0xe3f   :  { %2121 = vrcp.f32 %v625_v9  ;;  %v637_v15 = vand.u32 2147483648, %v625_v9  ;;  %vm631_vm14 = vweird.f32 %v625_v9  ;;  %v635_v16 = vand.u32 2147483647, %v625_v9 }
 0xe41   :  { %v638_v18 = vor.u32 1.1754944e-38, %v637_v15  ;;  %vm636_vm0 = vcmp.eq.f32.partialorder %v635_v16, 8.507059e+37 }
 0xe45   :  { %v2122_v10 = vpop.eup %2121 }
 0xe46   :  { %v627_v11 = vmul.f32 %v2122_v10, %v625_v9  ;;  %vm632_vm13 = vweird.f32 %v2122_v10 }
 0xe47   :  { %vm633_vm15 = vmor %vm631_vm14, %vm632_vm13 }
 0xe48   :  { %v628_v12 = vsub.f32 1.0, %v627_v11 }
 0xe4a   :  { %v629_v13 = vmul.f32 %v2122_v10, %v628_v12 }
 0xe4c   :  { %v630_v14 = vadd.f32 %v2122_v10, %v629_v13 }
 0xe4e   :  { %v634_v17 = vsel %vm633_vm15, %v2122_v10, %v630_v14 }
 0xe4f   :  { %v639_v20 = vsel %vm636_vm0, %v638_v18, %v634_v17 }
 0xe50   :  { %v642_v22 = vmul.f32 %v639_v20, %v588_v55 }
 0xead   :  { %v645_v19 = vpop.permute.xlu0 %644 }
 0xeae   :  { %v647_v21 = vmul.f32 %v645_v19, %v639_v20 }
 0xeb0   :  { %649 = vrot.lane.b32.xlu1 %v647_v21, %s2275_s2 }
 0xf22   :  { %v650_v23 = vpop.permute.xlu1 %649 }
 0xf23   :  { %v652_v24 = vadd.f32 %v650_v23, %v642_v22 }
 0xf25   :  { %2123 = vtanh.f32 %v652_v24 }
 0xf2b   :  { %v2124_v30 = vpop.eup %2123 }
 0xf2c   :  { %655 = vrot.lane.b32.xlu2 %v2124_v30, %s2274_s25 }
 0xf86   :  { %v656_v31 = vpop.permute.xlu2 %655 }
 0xf87   :  { %v2499_v32 = vmul.f32 %v656_v31, %v639_v20 }
 0xf89   :  { %v665_v33 = vpack.c.bf16 %v2499_v32, %v2499_v32 }
 0xf8b   :  { %667 = vrot.lane.b32.xlu0 %v665_v33, %s2275_s2 }
 0xffd   :  { %v668_v34 = vpop.permute.xlu0 %667 }
 0xffe   :  { %1988 = vmatmul.msk.bf16.vlgmr.msra.gmra.mxu1 %vm266_vm6, %v668_v34 }
 0xfff   :  { %1062 = vmatpush.bf16.msra.mxu1 %v2396_v26 }
0x1003   :  { %1063 = vmatpush.bf16.msra.mxu1 %v2402_v27 }
0x107b   :  { %v681_v37 = vpop.f32.mrf.mxu1 }
0x107c   :  { %v685_v38 = vadd.f32 %v681_v37, %v182_v36 }
0x107e   :  { %2125 = vtanh.f32 %v685_v38  ;;  %v1989_v41 = vmul.f32 -1.442695, %v685_v38 }
0x1080   :  { %2127 = vpow2.f32 %v1989_v41 }
0x1083   :  { %v683_v39 = vpop.f32.mrf.mxu1 }
0x1084   :  { %v2126_v40 = vpop.eup %2125 }
0x1085   :  { %708 = vrot.lane.b32.xlu1 %v2126_v40, %s2274_s25  ;;  %v186_v40 = vpop.f32.mrf.mxu0 }
0x1086   :  { %v2128_v42 = vpop.eup %2127  ;;  %v187_v41 = vadd.f32 %v2387_v3, %v186_v40 }
0x1087   :  { %v689_v43 = vadd.f32 1.0, %v2128_v42 }
0x1089   :  { %2129 = vrcp.f32 %v689_v43  ;;  %v701_v49 = vand.u32 2147483648, %v689_v43  ;;  %vm695_vm3 = vweird.f32 %v689_v43  ;;  %v699_v50 = vand.u32 2147483647, %v689_v43 }
0x108b   :  { %v702_v52 = vor.u32 1.1754944e-38, %v701_v49  ;;  %vm700_vm5 = vcmp.eq.f32.partialorder %v699_v50, 8.507059e+37 }
0x108f   :  { %v2130_v44 = vpop.eup %2129 }
0x1090   :  { %v691_v45 = vmul.f32 %v2130_v44, %v689_v43  ;;  %vm696_vm2 = vweird.f32 %v2130_v44 }
0x1091   :  { %vm697_vm4 = vmor %vm695_vm3, %vm696_vm2 }
0x1092   :  { %v692_v46 = vsub.f32 1.0, %v691_v45 }
0x1094   :  { %v693_v47 = vmul.f32 %v2130_v44, %v692_v46 }
0x1096   :  { %v694_v48 = vadd.f32 %v2130_v44, %v693_v47 }
0x1098   :  { %v698_v51 = vsel %vm697_vm4, %v2130_v44, %v694_v48 }
0x1099   :  { %v703_v54 = vsel %vm700_vm5, %v702_v52, %v698_v51 }
0x109a   :  { %v706_v56 = vmul.f32 %v703_v54, %v652_v24 }
0x10f7   :  { %v709_v53 = vpop.permute.xlu1 %708 }
0x10f8   :  { %v711_v55 = vmul.f32 %v709_v53, %v703_v54 }
0x10fa   :  { %713 = vrot.lane.b32.xlu2 %v711_v55, %s2275_s2 }
0x1154   :  { %v714_v57 = vpop.permute.xlu2 %713 }
0x1155   :  { %v716_v60 = vadd.f32 %v714_v57, %v706_v56 }
0x1157   :  { %2131 = vtanh.f32 %v716_v60 }
0x115d   :  { %v2132_v62 = vpop.eup %2131 }
0x115e   :  { %719 = vrot.lane.b32.xlu0 %v2132_v62, %s2274_s25 }
0x11d0   :  { %v720_v0 = vpop.permute.xlu0 %719 }
0x11d1   :  { %v2515_v1 = vmul.f32 %v720_v0, %v703_v54 }
0x11d3   :  { %v729_v2 = vpack.c.bf16 %v2515_v1, %v2515_v1 }
0x11d5   :  { %731 = vrot.lane.b32.xlu1 %v729_v2, %s2275_s2 }
0x1247   :  { %v732_v4 = vpop.permute.xlu1 %731 }
0x1248   :  { %1990 = vmatmul.msk.bf16.vlgmr.msra.gmra.mxu2 %vm266_vm6, %v732_v4  ;;  %v2047_v4 = vld [vmem:[%s3009_s22 + $0x28] sm:$0xff] }
0x1249   :  { %1126 = vmatpush.bf16.msra.mxu2 %v2396_v26  ;;  %1964 = vmatmul.msk.bf16.gmra.mxu0 %vm126_vm1, %v2047_v4 }
0x124d   :  { %1127 = vmatpush.bf16.msra.mxu2 %v2402_v27 }
0x12cb   :  { %v745_v7 = vpop.f32.mrf.mxu2 }
0x12cc   :  { %v749_v8 = vadd.f32 %v745_v7, %v185_v6 }
0x12ce   :  { %2133 = vtanh.f32 %v749_v8  ;;  %v1991_v11 = vmul.f32 -1.442695, %v749_v8 }
0x12d0   :  { %2135 = vpow2.f32 %v1991_v11 }
0x12d3   :  { %v747_v9 = vpop.f32.mrf.mxu2 }
0x12d4   :  { %v2134_v10 = vpop.eup %2133  ;;  %v189_v9 = vpop.f32.mrf.mxu0 }
0x12d5   :  { %772 = vrot.lane.b32.xlu2 %v2134_v10, %s2274_s25  ;;  %v190_v10 = vadd.f32 %v2387_v3, %v189_v9  ;;  %v2048_v9 = vld [vmem:[%s3009_s22 + $0x30] sm:$0xff] }
0x12d6   :  { %v2136_v12 = vpop.eup %2135  ;;  %1965 = vmatmul.msk.bf16.gmra.mxu0 %vm126_vm1, %v2048_v9 }
0x12d7   :  { %v753_v13 = vadd.f32 1.0, %v2136_v12 }
0x12d9   :  { %2137 = vrcp.f32 %v753_v13  ;;  %v765_v19 = vand.u32 2147483648, %v753_v13  ;;  %vm759_vm8 = vweird.f32 %v753_v13  ;;  %v763_v20 = vand.u32 2147483647, %v753_v13 }
0x12db   :  { %v766_v22 = vor.u32 1.1754944e-38, %v765_v19  ;;  %vm764_vm10 = vcmp.eq.f32.partialorder %v763_v20, 8.507059e+37 }
0x12df   :  { %v2138_v14 = vpop.eup %2137 }
0x12e0   :  { %v755_v15 = vmul.f32 %v2138_v14, %v753_v13  ;;  %vm760_vm7 = vweird.f32 %v2138_v14 }
0x12e1   :  { %vm761_vm9 = vmor %vm759_vm8, %vm760_vm7 }
0x12e2   :  { %v756_v16 = vsub.f32 1.0, %v755_v15 }
0x12e4   :  { %v757_v17 = vmul.f32 %v2138_v14, %v756_v16 }
0x12e6   :  { %v758_v18 = vadd.f32 %v2138_v14, %v757_v17 }
0x12e8   :  { %v762_v21 = vsel %vm761_vm9, %v2138_v14, %v758_v18 }
0x12e9   :  { %v767_v24 = vsel %vm764_vm10, %v766_v22, %v762_v21 }
0x12ea   :  { %v770_v31 = vmul.f32 %v767_v24, %v716_v60 }
0x132f   :  { %v773_v23 = vpop.permute.xlu2 %772 }
0x1330   :  { %v775_v30 = vmul.f32 %v773_v23, %v767_v24 }
0x1332   :  { %777 = vrot.lane.b32.xlu0 %v775_v30, %s2275_s2 }
0x13a4   :  { %v778_v33 = vpop.permute.xlu0 %777 }
0x13a5   :  { %v780_v34 = vadd.f32 %v778_v33, %v770_v31 }
0x13a7   :  { %2139 = vtanh.f32 %v780_v34 }
0x13ad   :  { %v2140_v35 = vpop.eup %2139 }
0x13ae   :  { %783 = vrot.lane.b32.xlu1 %v2140_v35, %s2274_s25 }
0x1420   :  { %v784_v36 = vpop.permute.xlu1 %783 }
0x1421   :  { %v2527_v37 = vmul.f32 %v784_v36, %v767_v24 }
0x1423   :  { %v793_v38 = vpack.c.bf16 %v2527_v37, %v2527_v37 }
0x1425   :  { %795 = vrot.lane.b32.xlu2 %v793_v38, %s2275_s2 }
0x147f   :  { %v796_v39 = vpop.permute.xlu2 %795 }
0x1480   :  { %1992 = vmatmul.msk.bf16.vlgmr.msra.gmra.mxu3 %vm266_vm6, %v796_v39 }
0x1481   :  { %1190 = vmatpush.bf16.msra.mxu3 %v2396_v26 }
0x1485   :  { %1191 = vmatpush.bf16.msra.mxu3 %v2402_v27 }
0x1503   :  { %v809_v42 = vpop.f32.mrf.mxu3 }
0x1504   :  { %v813_v43 = vadd.f32 %v809_v42, %v187_v41 }
0x1506   :  { %2141 = vtanh.f32 %v813_v43  ;;  %v1993_v46 = vmul.f32 -1.442695, %v813_v43 }
0x1508   :  { %2143 = vpow2.f32 %v1993_v46 }
0x150b   :  { %v811_v44 = vpop.f32.mrf.mxu3 }
0x150c   :  { %v2142_v45 = vpop.eup %2141 }
0x150d   :  { %836 = vrot.lane.b32.xlu0 %v2142_v45, %s2274_s25  ;;  %v191_v45 = vpop.f32.mrf.mxu0 }
0x150e   :  { %v2144_v47 = vpop.eup %2143  ;;  %v192_v46 = vadd.f32 %v2387_v3, %v191_v45 }
0x150f   :  { %v817_v48 = vadd.f32 1.0, %v2144_v47 }
0x1511   :  { %2145 = vrcp.f32 %v817_v48  ;;  %v829_v52 = vand.u32 2147483648, %v817_v48  ;;  %vm823_vm12 = vweird.f32 %v817_v48  ;;  %v827_v53 = vand.u32 2147483647, %v817_v48 }
0x1513   :  { %v830_v55 = vor.u32 1.1754944e-38, %v829_v52  ;;  %vm828_vm14 = vcmp.eq.f32.partialorder %v827_v53, 8.507059e+37 }
0x1517   :  { %v2146_v49 = vpop.eup %2145 }
0x1518   :  { %v819_v50 = vmul.f32 %v2146_v49, %v817_v48  ;;  %vm824_vm11 = vweird.f32 %v2146_v49 }
0x1519   :  { %vm825_vm13 = vmor %vm823_vm12, %vm824_vm11 }
0x151a   :  { %v820_v26 = vsub.f32 1.0, %v819_v50 }
0x151c   :  { %v821_v51 = vmul.f32 %v2146_v49, %v820_v26 }
0x151e   :  { %v822_v27 = vadd.f32 %v2146_v49, %v821_v51 }
0x1520   :  { %v826_v54 = vsel %vm825_vm13, %v2146_v49, %v822_v27 }
0x1521   :  { %v831_v57 = vsel %vm828_vm14, %v830_v55, %v826_v54 }
0x1522   :  { %v834_v62 = vmul.f32 %v831_v57, %v780_v34 }
0x157f   :  { %v837_v56 = vpop.permute.xlu0 %836 }
0x1580   :  { %v839_v60 = vmul.f32 %v837_v56, %v831_v57 }
0x1582   :  { %841 = vrot.lane.b32.xlu1 %v839_v60, %s2275_s2 }
0x15f4   :  { %v842_v63 = vpop.permute.xlu1 %841 }
0x15f5   :  { %v844_v0 = vadd.f32 %v842_v63, %v834_v62 }
0x15f7   :  { %2147 = vtanh.f32 %v844_v0 }
0x15fd   :  { %v2148_v2 = vpop.eup %2147 }
0x15fe   :  { %847 = vrot.lane.b32.xlu2 %v2148_v2, %s2274_s25 }
0x1658   :  { %v848_v5 = vpop.permute.xlu2 %847 }
0x1659   :  { %v2543_v6 = vmul.f32 %v848_v5, %v831_v57 }
0x165b   :  { %v857_v7 = vpack.c.bf16 %v2543_v6, %v2543_v6 }
0x165d   :  { %859 = vrot.lane.b32.xlu0 %v857_v7, %s2275_s2 }
0x16cf   :  { %v860_v8 = vpop.permute.xlu0 %859 }
0x16d0   :  { %1994 = vmatmul.msk.bf16.vlgmr.msrb.gmra.mxu1 %vm266_vm6, %v860_v8 }
0x174d   :  { %v873_v11 = vpop.f32.mrf.mxu1 }
0x174e   :  { %v877_v12 = vadd.f32 %v873_v11, %v190_v10 }
0x1750   :  { %2149 = vtanh.f32 %v877_v12  ;;  %v1995_v15 = vmul.f32 -1.442695, %v877_v12 }
0x1752   :  { %2151 = vpow2.f32 %v1995_v15  ;;  %v2576_v15 = vld [vmem:[%s3010_s24] ss:$0 sm:$0xff] }
0x1755   :  { %v875_v13 = vpop.f32.mrf.mxu1 }
0x1756   :  { %v2150_v14 = vpop.eup %2149 }
0x1757   :  { %900 = vrot.lane.b32.xlu1 %v2150_v14, %s2274_s25  ;;  %v194_v14 = vpop.f32.mrf.mxu0 }
0x1758   :  { %v2152_v16 = vpop.eup %2151 }
0x1759   :  { %v881_v17 = vadd.f32 1.0, %v2152_v16  ;;  %v195_v16 = vadd.f32 %v2576_v15, %v194_v14 }
0x175b   :  { %2153 = vrcp.f32 %v881_v17  ;;  %v893_v23 = vand.u32 2147483648, %v881_v17  ;;  %vm887_vm0 = vweird.f32 %v881_v17  ;;  %v891_v24 = vand.u32 2147483647, %v881_v17 }
0x175d   :  { %v894_v31 = vor.u32 1.1754944e-38, %v893_v23  ;;  %vm892_vm3 = vcmp.eq.f32.partialorder %v891_v24, 8.507059e+37 }
0x1761   :  { %v2154_v18 = vpop.eup %2153 }
0x1762   :  { %v883_v19 = vmul.f32 %v2154_v18, %v881_v17  ;;  %vm888_vm15 = vweird.f32 %v2154_v18 }
0x1763   :  { %vm889_vm2 = vmor %vm887_vm0, %vm888_vm15 }
0x1764   :  { %v884_v20 = vsub.f32 1.0, %v883_v19 }
0x1766   :  { %v885_v21 = vmul.f32 %v2154_v18, %v884_v20 }
0x1768   :  { %v886_v22 = vadd.f32 %v2154_v18, %v885_v21 }
0x176a   :  { %v890_v30 = vsel %vm889_vm2, %v2154_v18, %v886_v22 }
0x176b   :  { %v895_v34 = vsel %vm892_vm3, %v894_v31, %v890_v30 }
0x176c   :  { %v898_v36 = vmul.f32 %v895_v34, %v844_v0 }
0x17c9   :  { %v901_v33 = vpop.permute.xlu1 %900 }
0x17ca   :  { %v903_v35 = vmul.f32 %v901_v33, %v895_v34 }
0x17cc   :  { %905 = vrot.lane.b32.xlu2 %v903_v35, %s2275_s2 }
0x1826   :  { %v906_v38 = vpop.permute.xlu2 %905 }
0x1827   :  { %v908_v39 = vadd.f32 %v906_v38, %v898_v36 }
0x1829   :  { %2155 = vtanh.f32 %v908_v39 }
0x182f   :  { %v2156_v40 = vpop.eup %2155 }
0x1830   :  { %911 = vrot.lane.b32.xlu0 %v2156_v40, %s2274_s25 }
0x18a2   :  { %v912_v41 = vpop.permute.xlu0 %911 }
0x18a3   :  { %v2553_v42 = vmul.f32 %v912_v41, %v895_v34 }
0x18a5   :  { %v921_v43 = vpack.c.bf16 %v2553_v42, %v2553_v42 }
0x18a7   :  { %923 = vrot.lane.b32.xlu1 %v921_v43, %s2275_s2 }
0x1919   :  { %v924_v44 = vpop.permute.xlu1 %923 }
0x191a   :  { %1996 = vmatmul.msk.bf16.vlgmr.msrb.gmra.mxu2 %vm266_vm6, %v924_v44 }
0x199d   :  { %v937_v47 = vpop.f32.mrf.mxu2 }
0x199e   :  { %v941_v48 = vadd.f32 %v937_v47, %v192_v46 }
0x19a0   :  { %2157 = vtanh.f32 %v941_v48  ;;  %v1997_v26 = vmul.f32 -1.442695, %v941_v48 }
0x19a2   :  { %2159 = vpow2.f32 %v1997_v26 }
0x19a5   :  { %v939_v49 = vpop.f32.mrf.mxu2 }
0x19a6   :  { %v2158_v50 = vpop.eup %2157 }
0x19a7   :  { %964 = vrot.lane.b32.xlu2 %v2158_v50, %s2274_s25 }
0x19a8   :  { %v2160_v51 = vpop.eup %2159 }
0x19a9   :  { %v945_v27 = vadd.f32 1.0, %v2160_v51  ;;  %v196_v51 = vpop.f32.mrf.mxu0 }
0x19ab   :  { %2161 = vrcp.f32 %v945_v27  ;;  %v957_v57 = vand.u32 2147483648, %v945_v27  ;;  %vm951_vm5 = vweird.f32 %v945_v27  ;;  %v955_v3 = vand.u32 2147483647, %v945_v27 }
0x19ad   :  { %v958_v62 = vor.u32 1.1754944e-38, %v957_v57  ;;  %vm956_vm8 = vcmp.eq.f32.partialorder %v955_v3, 8.507059e+37 }
0x19b1   :  { %v2162_v52 = vpop.eup %2161 }
0x19b2   :  { %v947_v53 = vmul.f32 %v2162_v52, %v945_v27  ;;  %vm952_vm4 = vweird.f32 %v2162_v52  ;;  %v197_v27 = vadd.f32 %v2576_v15, %v196_v51 }
0x19b3   :  { %vm953_vm7 = vmor %vm951_vm5, %vm952_vm4 }
0x19b4   :  { %v948_v54 = vsub.f32 1.0, %v947_v53 }
0x19b6   :  { %v949_v55 = vmul.f32 %v2162_v52, %v948_v54 }
0x19b8   :  { %v950_v56 = vadd.f32 %v2162_v52, %v949_v55 }
0x19ba   :  { %v954_v60 = vsel %vm953_vm7, %v2162_v52, %v950_v56 }
0x19bb   :  { %v959_v0 = vsel %vm956_vm8, %v958_v62, %v954_v60 }
0x19bc   :  { %v962_v4 = vmul.f32 %v959_v0, %v908_v39 }
0x1a01   :  { %v965_v63 = vpop.permute.xlu2 %964 }
0x1a02   :  { %v967_v2 = vmul.f32 %v965_v63, %v959_v0 }
0x1a04   :  { %969 = vrot.lane.b32.xlu0 %v967_v2, %s2275_s2 }
0x1a76   :  { %v970_v5 = vpop.permute.xlu0 %969 }
0x1a77   :  { %v972_v7 = vadd.f32 %v970_v5, %v962_v4 }
0x1a79   :  { %2163 = vtanh.f32 %v972_v7 }
0x1a7f   :  { %v2164_v8 = vpop.eup %2163 }
0x1a80   :  { %975 = vrot.lane.b32.xlu1 %v2164_v8, %s2274_s25 }
0x1af2   :  { %v976_v10 = vpop.permute.xlu1 %975 }
0x1af3   :  { %v2567_v11 = vmul.f32 %v976_v10, %v959_v0 }
0x1af5   :  { %v985_v12 = vpack.c.bf16 %v2567_v11, %v2567_v11 }
0x1af7   :  { %987 = vrot.lane.b32.xlu2 %v985_v12, %s2275_s2 }
0x1b51   :  { %v988_v13 = vpop.permute.xlu2 %987 }
0x1b52   :  { %1998 = vmatmul.msk.bf16.vlgmr.msrb.gmra.mxu3 %vm266_vm6, %v988_v13 }
0x1bd5   :  { %v1001_v17 = vpop.f32.mrf.mxu3 }
0x1bd6   :  { %v1005_v18 = vadd.f32 %v1001_v17, %v195_v16 }
0x1bd8   :  { %2165 = vtanh.f32 %v1005_v18  ;;  %v1999_v21 = vmul.f32 -1.442695, %v1005_v18  ;;  %v2049_v18 = vld [vmem:[%s3009_s22 + $0x38] sm:$0xff] }
0x1bd9   :  { %1966 = vmatmul.msk.bf16.gmra.mxu0 %vm126_vm1, %v2049_v18 }
0x1bda   :  { %2167 = vpow2.f32 %v1999_v21 }
0x1bdd   :  { %v1003_v19 = vpop.f32.mrf.mxu3 }
0x1bde   :  { %v2166_v20 = vpop.eup %2165 }
0x1bdf   :  { %1028 = vrot.lane.b32.xlu0 %v2166_v20, %s2274_s25 }
0x1be0   :  { %v2168_v22 = vpop.eup %2167 }
0x1be1   :  { %v1009_v23 = vadd.f32 1.0, %v2168_v22 }
0x1be3   :  { %2169 = vrcp.f32 %v1009_v23  ;;  %v1021_v35 = vand.u32 2147483648, %v1009_v23  ;;  %vm1015_vm10 = vweird.f32 %v1009_v23  ;;  %v1019_v36 = vand.u32 2147483647, %v1009_v23 }
0x1be5   :  { %v1022_v39 = vor.u32 1.1754944e-38, %v1021_v35  ;;  %vm1020_vm12 = vcmp.eq.f32.partialorder %v1019_v36, 8.507059e+37 }
0x1be9   :  { %v2170_v24 = vpop.eup %2169 }
0x1bea   :  { %v1011_v30 = vmul.f32 %v2170_v24, %v1009_v23  ;;  %vm1016_vm9 = vweird.f32 %v2170_v24 }
0x1beb   :  { %vm1017_vm11 = vmor %vm1015_vm10, %vm1016_vm9 }
0x1bec   :  { %v1012_v31 = vsub.f32 1.0, %v1011_v30 }
0x1bee   :  { %v1013_v33 = vmul.f32 %v2170_v24, %v1012_v31 }
0x1bf0   :  { %v1014_v34 = vadd.f32 %v2170_v24, %v1013_v33 }
0x1bf2   :  { %v1018_v38 = vsel %vm1017_vm11, %v2170_v24, %v1014_v34  ;;  %vm1588_vm11 = vcmask 130048  }
0x1bf3   :  { %v1023_v41 = vsel %vm1020_vm12, %v1022_v39, %v1018_v38  ;;  %vm1699_vm12 = vcmask 523264  }
0x1bf4   :  { %v1026_v44 = vmul.f32 %v1023_v41, %v972_v7 }
0x1c51   :  { %v1029_v40 = vpop.permute.xlu0 %1028 }
0x1c52   :  { %v1031_v43 = vmul.f32 %v1029_v40, %v1023_v41 }
0x1c54   :  { %1033 = vrot.lane.b32.xlu1 %v1031_v43, %s2275_s2 }
0x1c56   :  { %v199_v23 = vpop.f32.mrf.mxu0 }
0x1c57   :  { %v200_v24 = vadd.f32 %v2576_v15, %v199_v23 }
0x1cc6   :  { %v1034_v45 = vpop.permute.xlu1 %1033 }
0x1cc7   :  { %v1036_v46 = vadd.f32 %v1034_v45, %v1026_v44 }
0x1cc9   :  { %2171 = vtanh.f32 %v1036_v46 }
0x1ccf   :  { %v2172_v47 = vpop.eup %2171 }
0x1cd0   :  { %1039 = vrot.lane.b32.xlu2 %v2172_v47, %s2274_s25 }
0x1d2a   :  { %v1040_v48 = vpop.permute.xlu2 %1039 }
0x1d2b   :  { %v2582_v49 = vmul.f32 %v1040_v48, %v1023_v41 }
0x1d2d   :  { %v1049_v50 = vpack.c.bf16 %v2582_v49, %v2582_v49 }
0x1d2f   :  { %1051 = vrot.lane.b32.xlu0 %v1049_v50, %s2275_s2 }
0x1da1   :  { %v1052_v26 = vpop.permute.xlu0 %1051 }
0x1da2   :  { %2000 = vmatmul.msk.bf16.vlgmr.msra.gmra.mxu1 %vm266_vm6, %v1052_v26 }
0x1e1f   :  { %v1065_v52 = vpop.f32.mrf.mxu1 }
0x1e20   :  { %v1069_v53 = vadd.f32 %v1065_v52, %v197_v27 }
0x1e22   :  { %2173 = vtanh.f32 %v1069_v53  ;;  %v2001_v56 = vmul.f32 -1.442695, %v1069_v53 }
0x1e24   :  { %2175 = vpow2.f32 %v2001_v56 }
0x1e27   :  { %v1067_v54 = vpop.f32.mrf.mxu1 }
0x1e28   :  { %v2174_v55 = vpop.eup %2173 }
0x1e29   :  { %1092 = vrot.lane.b32.xlu1 %v2174_v55, %s2274_s25 }
0x1e2a   :  { %v2176_v57 = vpop.eup %2175 }
0x1e2b   :  { %v1073_v3 = vadd.f32 1.0, %v2176_v57 }
0x1e2d   :  { %2177 = vrcp.f32 %v1073_v3  ;;  %v1085_v4 = vand.u32 2147483648, %v1073_v3  ;;  %vm1079_vm14 = vweird.f32 %v1073_v3  ;;  %v1083_v5 = vand.u32 2147483647, %v1073_v3 }
0x1e2f   :  { %v1086_v8 = vor.u32 1.1754944e-38, %v1085_v4  ;;  %vm1084_vm0 = vcmp.eq.f32.partialorder %v1083_v5, 8.507059e+37 }
0x1e33   :  { %v2178_v60 = vpop.eup %2177 }
0x1e34   :  { %v1075_v62 = vmul.f32 %v2178_v60, %v1073_v3  ;;  %vm1080_vm13 = vweird.f32 %v2178_v60 }
0x1e35   :  { %vm1081_vm15 = vmor %vm1079_vm14, %vm1080_vm13  ;;  %vm1920_vm14 = vcmask 7168  }
0x1e36   :  { %v1076_v63 = vsub.f32 1.0, %v1075_v62 }
0x1e38   :  { %v1077_v0 = vmul.f32 %v2178_v60, %v1076_v63  ;;  %v201_v63 = vpop.f32.mrf.mxu0 }
0x1e3a   :  { %v1078_v2 = vadd.f32 %v2178_v60, %v1077_v0  ;;  %v202_v0 = vadd.f32 %v2576_v15, %v201_v63 }
0x1e3c   :  { %v1082_v7 = vsel %vm1081_vm15, %v2178_v60, %v1078_v2 }
0x1e3d   :  { %v1087_v10 = vsel %vm1084_vm0, %v1086_v8, %v1082_v7 }
0x1e3e   :  { %v1090_v13 = vmul.f32 %v1087_v10, %v1036_v46 }
0x1e9b   :  { %v1093_v9 = vpop.permute.xlu1 %1092 }
0x1e9c   :  { %v1095_v12 = vmul.f32 %v1093_v9, %v1087_v10 }
0x1e9e   :  { %1097 = vrot.lane.b32.xlu2 %v1095_v12, %s2275_s2 }
0x1ef8   :  { %v1098_v14 = vpop.permute.xlu2 %1097 }
0x1ef9   :  { %v1100_v16 = vadd.f32 %v1098_v14, %v1090_v13 }
0x1efb   :  { %2179 = vtanh.f32 %v1100_v16 }
0x1f01   :  { %v2180_v17 = vpop.eup %2179 }
0x1f02   :  { %1103 = vrot.lane.b32.xlu0 %v2180_v17, %s2274_s25 }
0x1f74   :  { %v1104_v19 = vpop.permute.xlu0 %1103 }
0x1f75   :  { %v2596_v20 = vmul.f32 %v1104_v19, %v1087_v10 }
0x1f77   :  { %v1113_v21 = vpack.c.bf16 %v2596_v20, %v2596_v20 }
0x1f79   :  { %1115 = vrot.lane.b32.xlu1 %v1113_v21, %s2275_s2 }
0x1feb   :  { %v1116_v22 = vpop.permute.xlu1 %1115 }
0x1fec   :  { %2002 = vmatmul.msk.bf16.vlgmr.msra.gmra.mxu2 %vm266_vm6, %v1116_v22 }
0x206f   :  { %v1129_v30 = vpop.f32.mrf.mxu2 }
0x2070   :  { %v1133_v31 = vadd.f32 %v1129_v30, %v200_v24 }
0x2072   :  { %2181 = vtanh.f32 %v1133_v31  ;;  %v2003_v35 = vmul.f32 -1.442695, %v1133_v31 }
0x2074   :  { %2183 = vpow2.f32 %v2003_v35 }
0x2077   :  { %v1131_v33 = vpop.f32.mrf.mxu2 }
0x2078   :  { %v2182_v34 = vpop.eup %2181 }
0x2079   :  { %1156 = vrot.lane.b32.xlu2 %v2182_v34, %s2274_s25 }
0x207a   :  { %v2184_v36 = vpop.eup %2183 }
0x207b   :  { %v1137_v38 = vadd.f32 1.0, %v2184_v36 }
0x207d   :  { %2185 = vrcp.f32 %v1137_v38  ;;  %v1149_v45 = vand.u32 2147483648, %v1137_v38  ;;  %vm1143_vm3 = vweird.f32 %v1137_v38  ;;  %v1147_v46 = vand.u32 2147483647, %v1137_v38 }
0x207f   :  { %v1150_v48 = vor.u32 1.1754944e-38, %v1149_v45  ;;  %vm1148_vm5 = vcmp.eq.f32.partialorder %v1147_v46, 8.507059e+37 }
0x2083   :  { %v2186_v39 = vpop.eup %2185 }
0x2084   :  { %v1139_v40 = vmul.f32 %v2186_v39, %v1137_v38  ;;  %vm1144_vm2 = vweird.f32 %v2186_v39 }
0x2085   :  { %vm1145_vm4 = vmor %vm1143_vm3, %vm1144_vm2 }
0x2086   :  { %v1140_v41 = vsub.f32 1.0, %v1139_v40 }
0x2088   :  { %v1141_v43 = vmul.f32 %v2186_v39, %v1140_v41 }
0x208a   :  { %v1142_v44 = vadd.f32 %v2186_v39, %v1141_v43 }
0x208c   :  { %v1146_v47 = vsel %vm1145_vm4, %v2186_v39, %v1142_v44 }
0x208d   :  { %v1151_v26 = vsel %vm1148_vm5, %v1150_v48, %v1146_v47 }
0x208e   :  { %v1154_v27 = vmul.f32 %v1151_v26, %v1100_v16 }
0x20d3   :  { %v1157_v50 = vpop.permute.xlu2 %1156 }
0x20d4   :  { %v1159_v51 = vmul.f32 %v1157_v50, %v1151_v26 }
0x20d6   :  { %1161 = vrot.lane.b32.xlu0 %v1159_v51, %s2275_s2  ;;  %v2694_v51 = vld [vmem:[%s2986_s5] ss:$0 sm:$0xff] }
0x2148   :  { %v1162_v52 = vpop.permute.xlu0 %1161 }
0x2149   :  { %v2605_v53 = vadd.f32 %v1162_v52, %v1154_v27 }
0x214b   :  { %2187 = vtanh.f32 %v2605_v53 }
0x2151   :  { %v2188_v54 = vpop.eup %2187 }
0x2152   :  { %1167 = vrot.lane.b32.xlu1 %v2188_v54, %s2274_s25 }
0x21c4   :  { %v1168_v55 = vpop.permute.xlu1 %1167 }
0x21c5   :  { %v1170_v56 = vmul.f32 %v1168_v55, %v1151_v26 }
0x21c7   :  { %v1177_v57 = vpack.c.bf16 %v1170_v56, %v1170_v56 }
0x21c9   :  { %1179 = vrot.lane.b32.xlu2 %v1177_v57, %s2275_s2 }
0x21d1   :  { %263 = vrot.lane.b32.xlu2 %v2415_v29, %s2275_s2 }
0x21d9   :  { %468 = vrot.lane.b32.xlu2 %v2459_v58, %s2275_s2 }
0x2223   :  { %v1180_v3 = vpop.permute.xlu2 %1179 }
0x2224   :  { %2004 = vmatmul.msk.bf16.vlgmr.msra.gmra.mxu3 %vm266_vm6, %v1180_v3 }
0x222b   :  { %v264_v60 = vpop.permute.xlu2 %263 }
0x222c   :  { %267 = vst.msk [vmem:[#allocation3] sm:$0xff] %vm266_vm6, %v264_v60 }
0x2233   :  { %v469_v62 = vpop.permute.xlu2 %468  ;;  %v2640_v22 = vld [vmem:[#allocation3] sm:$0xff] }
0x2234   :  { %471 = vst.msk [vmem:[#allocation3 + $0x18] sm:$0xff] %vm266_vm6, %v469_v62 }
0x22a7   :  { %v1193_v2 = vpop.f32.mrf.mxu3 }
0x22a8   :  { %v1197_v4 = vadd.f32 %v1193_v2, %v202_v0 }
0x22aa   :  { %2189 = vtanh.f32 %v1197_v4  ;;  %v2005_v58 = vmul.f32 -1.442695, %v1197_v4 }
0x22ac   :  { %2191 = vpow2.f32 %v2005_v58 }
0x22af   :  { %v1195_v5 = vpop.f32.mrf.mxu3 }
0x22b0   :  { %v2190_v29 = vpop.eup %2189 }
0x22b1   :  { %1220 = vrot.lane.b32.xlu0 %v2190_v29, %s2274_s25 }
0x22b2   :  { %v2192_v15 = vpop.eup %2191 }
0x22b3   :  { %v1201_v7 = vadd.f32 1.0, %v2192_v15 }
0x22b5   :  { %2193 = vrcp.f32 %v1201_v7  ;;  %v1213_v12 = vand.u32 2147483648, %v1201_v7  ;;  %vm1207_vm8 = vweird.f32 %v1201_v7  ;;  %v1211_v13 = vand.u32 2147483647, %v1201_v7 }
0x22b7   :  { %v1214_v16 = vor.u32 1.1754944e-38, %v1213_v12  ;;  %vm1212_vm10 = vcmp.eq.f32.partialorder %v1211_v13, 8.507059e+37 }
0x22b9   :  { %340 = vrot.lane.b32.xlu0 %v2431_v59, %s2275_s2 }
0x22bb   :  { %v2194_v59 = vpop.eup %2193 }
0x22bc   :  { %v1203_v8 = vmul.f32 %v2194_v59, %v1201_v7  ;;  %vm1208_vm7 = vweird.f32 %v2194_v59 }
0x22bd   :  { %vm1209_vm9 = vmor %vm1207_vm8, %vm1208_vm7 }
0x22c1   :  { %532 = vrot.lane.b32.xlu0 %v2471_v28, %s2275_s2  ;;  %v2053_v28 = vld [vmem:[%s2985_s4 + $0x8] sm:$0xff] }
0x22c2   :  { %1310 = vmatpush.bf16.msrb.mxu1 %v2053_v28  ;;  %2054 = vmatpush.bf16.msrb.mxu2 %v2053_v28 }
0x22c9   :  { %660 = vrot.lane.b32.xlu0 %v2499_v32, %s2275_s2  ;;  %v2052_v32 = vld [vmem:[%s2985_s4] sm:$0xff] }
0x22ca   :  { %1311 = vmatpush.bf16.msrb.mxu1 %v2052_v32  ;;  %2055 = vmatpush.bf16.msrb.mxu2 %v2052_v32 }
0x22d1   :  { %1108 = vrot.lane.b32.xlu0 %v2596_v20, %s2275_s2 }
0x22d9   :  { %1172 = vrot.lane.b32.xlu0 %v1170_v56, %s2275_s2 }
0x22e1   :  { %980 = vrot.lane.b32.xlu0 %v2567_v11, %s2275_s2  ;;  %v1204_v11 = vsub.f32 1.0, %v1203_v8 }
0x22e3   :  { %v1205_v9 = vmul.f32 %v2194_v59, %v1204_v11 }
0x22e5   :  { %v1206_v10 = vadd.f32 %v2194_v59, %v1205_v9 }
0x22e7   :  { %v1210_v14 = vsel %vm1209_vm9, %v2194_v59, %v1206_v10 }
0x22e8   :  { %v1215_v18 = vsel %vm1212_vm10, %v1214_v16, %v1210_v14 }
0x2323   :  { %v1221_v17 = vpop.permute.xlu0 %1220 }
0x2324   :  { %v1223_v19 = vmul.f32 %v1221_v17, %v1215_v18 }
0x2326   :  { %1225 = vrot.lane.b32.xlu1 %v1223_v19, %s2275_s2 }
0x232b   :  { %v341_v20 = vpop.permute.xlu0 %340 }
0x232c   :  { %343 = vst.msk [vmem:[#allocation3 + $0x8] sm:$0xff] %vm266_vm6, %v341_v20 }
0x232e   :  { %404 = vrot.lane.b32.xlu1 %v2443_v25, %s2275_s2 }
0x2333   :  { %v533_v21 = vpop.permute.xlu0 %532  ;;  %v2642_v23 = vld [vmem:[#allocation3 + $0x8] sm:$0xff] }
0x2334   :  { %535 = vst.msk [vmem:[#allocation3 + $0x20] sm:$0xff] %vm266_vm6, %v533_v21  ;;  %v1256_v24 = vpack.c.bf16 %v2642_v23, %v2640_v22 }
0x2336   :  { %596 = vrot.lane.b32.xlu1 %v2487_v61, %s2275_s2  ;;  %2014 = vmatmul.msk.bf16.vlgmr.msrb.gmra.mxu1 %vm266_vm6, %v1256_v24  ;;  %v1218_v61 = vmul.f32 %v1215_v18, %v2605_v53 }
0x233b   :  { %v661_v30 = vpop.permute.xlu0 %660  ;;  %v2676_v45 = vld [vmem:[#allocation3 + $0x20] sm:$0xff] }
0x233c   :  { %663 = vst.msk [vmem:[#allocation3 + $0x30] sm:$0xff] %vm266_vm6, %v661_v30 }
0x233e   :  { %724 = vrot.lane.b32.xlu1 %v2515_v1, %s2275_s2 }
0x2343   :  { %v1109_v25 = vpop.permute.xlu0 %1108  ;;  %v2686_v48 = vld [vmem:[#allocation3 + $0x30] sm:$0xff] }
0x2344   :  { %1111 = vst.msk [vmem:[#allocation3 + $0x68] sm:$0xff] %vm266_vm6, %v1109_v25 }
0x2346   :  { %788 = vrot.lane.b32.xlu1 %v2527_v37, %s2275_s2  ;;  %v2663_v37 = vld [vmem:[#allocation3 + $0x18] sm:$0xff] }
0x234b   :  { %v1173_v31 = vpop.permute.xlu0 %1172  ;;  %v2702_v57 = vld [vmem:[#allocation3 + $0x68] sm:$0xff] }
0x234c   :  { %1175 = vst.msk [vmem:[#allocation3 + $0x70] sm:$0xff] %vm266_vm6, %v1173_v31 }
0x2353   :  { %v981_v33 = vpop.permute.xlu0 %980 }
0x2354   :  { %983 = vst.msk [vmem:[#allocation3 + $0x58] sm:$0xff] %vm266_vm6, %v981_v33 }
0x235b   :  { %v2718_v5 = vld [vmem:[#allocation3 + $0x58] sm:$0xff] }
0x2398   :  { %v1226_v34 = vpop.permute.xlu1 %1225 }
0x2399   :  { %v1228_v35 = vadd.f32 %v1226_v34, %v1218_v61 }
0x239b   :  { %2195 = vtanh.f32 %v1228_v35 }
0x23a0   :  { %v405_v36 = vpop.permute.xlu1 %404 }
0x23a1   :  { %v2196_v38 = vpop.eup %2195  ;;  %407 = vst.msk [vmem:[#allocation3 + $0x10] sm:$0xff] %vm266_vm6, %v405_v36  ;;  %v2738_v36 = vld [vmem:[#allocation3 + $0x70] sm:$0xff] }
0x23a2   :  { %1231 = vrot.lane.b32.xlu2 %v2196_v38, %s2274_s25 }
0x23a8   :  { %v597_v1 = vpop.permute.xlu1 %596  ;;  %v2661_v39 = vld [vmem:[#allocation3 + $0x10] sm:$0xff] }
0x23a9   :  { %599 = vst.msk [vmem:[#allocation3 + $0x28] sm:$0xff] %vm266_vm6, %v597_v1  ;;  %v1257_v40 = vpack.c.bf16 %v2663_v37, %v2661_v39 }
0x23aa   :  { %1044 = vrot.lane.b32.xlu2 %v2582_v49, %s2275_s2 }
0x23ab   :  { %2015 = vmatmul.msk.bf16.gmra.mxu1 %vm266_vm6, %v1257_v40 }
0x23b0   :  { %v725_v41 = vpop.permute.xlu1 %724  ;;  %v2674_v43 = vld [vmem:[#allocation3 + $0x28] sm:$0xff] }
0x23b1   :  { %727 = vst.msk [vmem:[#allocation3 + $0x38] sm:$0xff] %vm266_vm6, %v725_v41  ;;  %v1258_v46 = vpack.c.bf16 %v2674_v43, %v2676_v45 }
0x23b2   :  { %852 = vrot.lane.b32.xlu2 %v2543_v6, %s2275_s2 }
0x23b3   :  { %v1313_v47 = vpop.f32.mrf.mxu1 }
0x23b8   :  { %v789_v44 = vpop.permute.xlu1 %788  ;;  %v2684_v49 = vld [vmem:[#allocation3 + $0x38] sm:$0xff] }
0x23b9   :  { %791 = vst.msk [vmem:[#allocation3 + $0x40] sm:$0xff] %vm266_vm6, %v789_v44  ;;  %v1259_v6 = vpack.c.bf16 %v2684_v49, %v2686_v48 }
0x23ba   :  { %916 = vrot.lane.b32.xlu2 %v2553_v42, %s2275_s2 }
0x23bb   :  { %2016 = vmatmul.msk.bf16.gmra.mxu1 %vm266_vm6, %v1258_v46  ;;  %v1315_v50 = vpop.f32.mrf.mxu1 }
0x23bc   :  { %2197 = vtanh.f32 %v1315_v50 }
0x23bd   :  { %2199 = vtanh.f32 %v1313_v47 }
0x23c0   :  { %v2708_v62 = vld [vmem:[#allocation3 + $0x40] sm:$0xff] }
0x23c2   :  { %v2198_v26 = vpop.eup %2197 }
0x23c3   :  { %v1374_v42 = vmul.f32 %v2198_v26, %v2694_v51  ;;  %v2200_v2 = vpop.eup %2199 }
0x23c4   :  { %v1373_v29 = vmul.f32 %v2200_v2, %v2694_v51 }
0x23c5   :  { %v1392_v27 = vsel %vm266_vm6, %v1374_v42, 0.0 }
0x23c6   :  { %v1389_v7 = vsel %vm266_vm6, %v1373_v29, 0.0 }
0x23cb   :  { %2017 = vmatmul.msk.bf16.gmra.mxu1 %vm266_vm6, %v1259_v6 }
0x23e3   :  { %1393 = vadd.xlane.f32.xlu2 %v1392_v27 }
0x23fc   :  { %v1232_v52 = vpop.permute.xlu2 %1231 }
0x23fd   :  { %v1234_v53 = vmul.f32 %v1232_v52, %v1215_v18 }
0x23ff   :  { %1236 = vrot.lane.b32.xlu1 %v1234_v53, %s2275_s2 }
0x2404   :  { %v1045_v54 = vpop.permute.xlu2 %1044 }
0x2405   :  { %1047 = vst.msk [vmem:[#allocation3 + $0x60] sm:$0xff] %vm266_vm6, %v1045_v54 }
0x240c   :  { %v853_v55 = vpop.permute.xlu2 %852  ;;  %v2700_v56 = vld [vmem:[#allocation3 + $0x60] sm:$0xff] }
0x240d   :  { %855 = vst.msk [vmem:[#allocation3 + $0x48] sm:$0xff] %vm266_vm6, %v853_v55  ;;  %v1262_v3 = vpack.c.bf16 %v2702_v57, %v2700_v56 }
0x240f   :  { %2020 = vmatmul.msk.bf16.vlgmr.msrb.gmra.mxu2 %vm266_vm6, %v1262_v3 }
0x2414   :  { %v917_v60 = vpop.permute.xlu2 %916  ;;  %v2710_v63 = vld [vmem:[#allocation3 + $0x48] sm:$0xff] }
0x2415   :  { %919 = vst.msk [vmem:[#allocation3 + $0x50] sm:$0xff] %vm266_vm6, %v917_v60  ;;  %v1260_v0 = vpack.c.bf16 %v2710_v63, %v2708_v62 }
0x2417   :  { %2018 = vmatmul.msk.bf16.gmra.mxu1 %vm266_vm6, %v1260_v0 }
0x241c   :  { %v2716_v4 = vld [vmem:[#allocation3 + $0x50] sm:$0xff] }
0x241d   :  { %v1261_v58 = vpack.c.bf16 %v2718_v5, %v2716_v4 }
0x2427   :  { %2019 = vmatmul.msk.bf16.gmra.mxu1 %vm266_vm6, %v1261_v58 }
0x2428   :  { %v1318_v15 = vpop.f32.mrf.mxu1 }
0x2429   :  { %2201 = vtanh.f32 %v1318_v15  ;;  %1390 = vadd.xlane.f32.xlu1 %v1389_v7 }
0x242f   :  { %v2202_v59 = vpop.eup %2201 }
0x2430   :  { %v1320_v28 = vpop.f32.mrf.mxu1  ;;  %v1375_v32 = vmul.f32 %v2202_v59, %v2694_v51 }
0x2431   :  { %2203 = vtanh.f32 %v1320_v28 }
0x2432   :  { %v1395_v8 = vsel %vm266_vm6, %v1375_v32, 0.0 }
0x2433   :  { %1396 = vadd.xlane.f32.xlu0 %v1395_v8 }
0x2437   :  { %v2204_v11 = vpop.eup %2203 }
0x2438   :  { %v1323_v9 = vpop.f32.mrf.mxu1  ;;  %v1376_v10 = vmul.f32 %v2204_v11, %v2694_v51 }
0x2439   :  { %2205 = vtanh.f32 %v1323_v9 }
0x243a   :  { %v1398_v12 = vsel %vm266_vm6, %v1376_v10, 0.0 }
0x243b   :  { %1399 = vadd.xlane.f32.xlu2 %v1398_v12 }
0x243f   :  { %v2206_v13 = vpop.eup %2205 }
0x2440   :  { %v1325_v14 = vpop.f32.mrf.mxu1  ;;  %v1377_v16 = vmul.f32 %v2206_v13, %v2694_v51 }
0x2441   :  { %2207 = vtanh.f32 %v1325_v14 }
0x2442   :  { %v1401_v17 = vsel %vm266_vm6, %v1377_v16, 0.0 }
0x2443   :  { %1402 = vadd.xlane.f32.xlu1 %v1401_v17 }
0x2447   :  { %v2208_v18 = vpop.eup %2207 }
0x2448   :  { %v1328_v19 = vpop.f32.mrf.mxu1  ;;  %v1378_v20 = vmul.f32 %v2208_v18, %v2694_v51 }
0x2449   :  { %2209 = vtanh.f32 %v1328_v19 }
0x244a   :  { %v1404_v21 = vsel %vm266_vm6, %v1378_v20, 0.0 }
0x244b   :  { %1405 = vadd.xlane.f32.xlu2 %v1404_v21 }
0x244f   :  { %v2210_v24 = vpop.eup %2209 }
0x2450   :  { %v1330_v30 = vpop.f32.mrf.mxu1  ;;  %v1379_v25 = vmul.f32 %v2210_v24, %v2694_v51 }
0x2451   :  { %2211 = vtanh.f32 %v1330_v30 }
0x2452   :  { %v1407_v31 = vsel %vm266_vm6, %v1379_v25, 0.0 }
0x2453   :  { %1408 = vadd.xlane.f32.xlu0 %v1407_v31 }
0x2456   :  { %v2761_v16 = vpop.xlane.xlu2 %1393 }
0x2457   :  { %v2212_v33 = vpop.eup %2211 }
0x2458   :  { %v1380_v61 = vmul.f32 %v2212_v33, %v2694_v51 }
0x245a   :  { %v1410_v34 = vsel %vm266_vm6, %v1380_v61, 0.0 }
0x245b   :  { %1411 = vadd.xlane.f32.xlu1 %v1410_v34 }
0x2471   :  { %v1237_v35 = vpop.permute.xlu1 %1236 }
0x2472   :  { %1239 = vst.msk [vmem:[#allocation3 + $0x78] sm:$0xff] %vm266_vm6, %v1237_v35 }
0x2479   :  { %v2740_v38 = vld [vmem:[#allocation3 + $0x78] sm:$0xff] }
0x247a   :  { %v1263_v1 = vpack.c.bf16 %v2740_v38, %v2738_v36 }
0x247c   :  { %2021 = vmatmul.msk.bf16.gmra.mxu2 %vm266_vm6, %v1263_v1 }
0x2492   :  { %v1343_v44 = vpop.f32.mrf.mxu2 }
0x2494   :  { %v1333_v40 = vpop.f32.mrf.mxu1 }
0x2495   :  { %2213 = vtanh.f32 %v1333_v40 }
0x249a   :  { %v1345_v27 = vpop.f32.mrf.mxu2 }
0x249b   :  { %v2214_v41 = vpop.eup %2213 }
0x249c   :  { %v1335_v46 = vpop.f32.mrf.mxu1  ;;  %v1381_v47 = vmul.f32 %v2214_v41, %v2694_v51  ;;  %v2763_v17 = vpop.xlane.xlu1 %1390 }
0x249d   :  { %2215 = vtanh.f32 %v1335_v46 }
0x249e   :  { %v1413_v6 = vsel %vm266_vm6, %v1381_v47, 0.0  ;;  %2217 = vtanh.f32 %v1343_v44 }
0x249f   :  { %1414 = vadd.xlane.f32.xlu2 %v1413_v6 }
0x24a3   :  { %v2216_v50 = vpop.eup %2215 }
0x24a4   :  { %v1338_v26 = vpop.f32.mrf.mxu1  ;;  %v1382_v42 = vmul.f32 %v2216_v50, %v2694_v51  ;;  %v2218_v53 = vpop.eup %2217 }
0x24a5   :  { %2219 = vtanh.f32 %v1338_v26  ;;  %v1385_v54 = vmul.f32 %v2218_v53, %v2694_v51 }
0x24a6   :  { %v1416_v52 = vsel %vm266_vm6, %v1382_v42, 0.0  ;;  %2221 = vtanh.f32 %v1345_v27  ;;  %v2765_v18 = vpop.xlane.xlu0 %1396 }
0x24a7   :  { %1417 = vadd.xlane.f32.xlu0 %v1416_v52  ;;  %v1425_v0 = vsel %vm266_vm6, %v1385_v54, 0.0 }
0x24ab   :  { %v2220_v55 = vpop.eup %2219 }
0x24ac   :  { %v1340_v3 = vpop.f32.mrf.mxu1  ;;  %v1383_v60 = vmul.f32 %v2220_v55, %v2694_v51  ;;  %v2222_v29 = vpop.eup %2221 }
0x24ad   :  { %2223 = vtanh.f32 %v1340_v3  ;;  %v1386_v58 = vmul.f32 %v2222_v29, %v2694_v51 }
0x24ae   :  { %v1419_v2 = vsel %vm266_vm6, %v1383_v60, 0.0  ;;  %v2767_v19 = vpop.xlane.xlu2 %1399 }
0x24af   :  { %1426 = vadd.xlane.f32.xlu0 %v1425_v0  ;;  %1420 = vadd.xlane.f32.xlu1 %v1419_v2  ;;  %v1428_v59 = vsel %vm266_vm6, %v1386_v58, 0.0 }
0x24b3   :  { %v2224_v15 = vpop.eup %2223 }
0x24b4   :  { %v1384_v7 = vmul.f32 %v2224_v15, %v2694_v51 }
0x24b6   :  { %v1422_v28 = vsel %vm266_vm6, %v1384_v7, 0.0  ;;  %v2769_v20 = vpop.xlane.xlu1 %1402 }
0x24b7   :  { %1429 = vadd.xlane.f32.xlu1 %v1428_v59  ;;  %1423 = vadd.xlane.f32.xlu2 %v1422_v28  ;;  %v1437_v1 = vmax.f32 %v2763_v17, %v2769_v20 }
0x24be   :  { %v2771_v21 = vpop.xlane.xlu2 %1405 }
0x24bf   :  { %v1438_v34 = vmax.f32 %v2761_v16, %v2771_v21 }
0x24c6   :  { %v2773_v24 = vpop.xlane.xlu0 %1408 }
0x24c7   :  { %v1439_v40 = vmax.f32 %v2765_v18, %v2773_v24 }
0x24ce   :  { %v2775_v30 = vpop.xlane.xlu1 %1411 }
0x24cf   :  { %v1440_v41 = vmax.f32 %v2767_v19, %v2775_v30 }
0x24ff   :  { %v1348_v32 = vpop.f32.mrf.mxu2 }
0x2500   :  { %2225 = vtanh.f32 %v1348_v32 }
0x2506   :  { %v2226_v8 = vpop.eup %2225 }
0x2507   :  { %v1350_v11 = vpop.f32.mrf.mxu2  ;;  %v1387_v9 = vmul.f32 %v2226_v8, %v2694_v51 }
0x2508   :  { %2227 = vtanh.f32 %v1350_v11 }
0x2509   :  { %v1431_v10 = vsel %vm266_vm6, %v1387_v9, 0.0 }
0x250a   :  { %1432 = vadd.xlane.f32.xlu2 %v1431_v10 }
0x250e   :  { %v2228_v12 = vpop.eup %2227 }
0x250f   :  { %v1388_v13 = vmul.f32 %v2228_v12, %v2694_v51 }
0x2511   :  { %v1434_v14 = vsel %vm266_vm6, %v1388_v13, 0.0 }
0x2512   :  { %1435 = vadd.xlane.f32.xlu0 %v1434_v14  ;;  %v1415_v51 = vpop.xlane.xlu2 %1414 }
0x2513   :  { %v1441_v47 = vmax.f32 %v1437_v1, %v1415_v51 }
0x251a   :  { %v1418_v25 = vpop.xlane.xlu0 %1417 }
0x251b   :  { %v1442_v44 = vmax.f32 %v1438_v34, %v1418_v25 }
0x2522   :  { %v1421_v31 = vpop.xlane.xlu1 %1420  ;;  %v1427_v61 = vpop.xlane.xlu0 %1426 }
0x2523   :  { %v1443_v6 = vmax.f32 %v1439_v40, %v1421_v31  ;;  %v1445_v27 = vmax.f32 %v1441_v47, %v1427_v61 }
0x252a   :  { %v1424_v33 = vpop.xlane.xlu2 %1423  ;;  %v1430_v35 = vpop.xlane.xlu1 %1429 }
0x252b   :  { %v1446_v50 = vmax.f32 %v1442_v44, %v1430_v35  ;;  %v1444_v26 = vmax.f32 %v1440_v41, %v1424_v33 }
0x252d   :  { %v1449_v54 = vmax.f32 %v1445_v27, %v1446_v50 }
0x257d   :  { %v1433_v46 = vpop.xlane.xlu2 %1432 }
0x257e   :  { %v1447_v52 = vmax.f32 %v1443_v6, %v1433_v46 }
0x2585   :  { %v1436_v42 = vpop.xlane.xlu0 %1435 }
0x2586   :  { %v1448_v53 = vmax.f32 %v1444_v26, %v1436_v42 }
0x2588   :  { %v1450_v55 = vmax.f32 %v1447_v52, %v1448_v53 }
0x258a   :  { %v1451_v3 = vmax.f32 %v1449_v54, %v1450_v55 }
0x258c   :  { %v1452_v60 = vrot.slane %v1451_v3, 4 }
0x258e   :  { %v1453_v0 = vmax.f32 %v1451_v3, %v1452_v60 }
0x2590   :  { %v1454_v2 = vrot.slane %v1453_v0, 2 }
0x2592   :  { %v1455_v29 = vmax.f32 %v1453_v0, %v1454_v2 }
0x2594   :  { %v1456_v58 = vrot.slane %v1455_v29, 1 }
0x2596   :  { %v2785_v15 = vmax.f32 %v1455_v29, %v1456_v58 }
0x2598   :  { %v1473_v7 = vsub.f32 %v1436_v42, %v2785_v15  ;;  %v1472_v59 = vsub.f32 %v1433_v46, %v2785_v15  ;;  %v1471_v28 = vsub.f32 %v1430_v35, %v2785_v15  ;;  %v1470_v32 = vsub.f32 %v1427_v61, %v2785_v15 }
0x2599   :  { %v1469_v10 = vsub.f32 %v1424_v33, %v2785_v15  ;;  %v1468_v13 = vsub.f32 %v1421_v31, %v2785_v15  ;;  %v1467_v34 = vsub.f32 %v1418_v25, %v2785_v15  ;;  %v1466_v35 = vsub.f32 %v1415_v51, %v2785_v15 }
0x259a   :  { %v1504_v8 = vmul.f32 1.442695, %v1473_v7  ;;  %v1502_v11 = vmul.f32 1.442695, %v1472_v59  ;;  %v1500_v9 = vmul.f32 1.442695, %v1471_v28  ;;  %v1465_v41 = vsub.f32 %v2775_v30, %v2785_v15 }
0x259b   :  { %v1498_v12 = vmul.f32 1.442695, %v1470_v32  ;;  %v1496_v14 = vmul.f32 1.442695, %v1469_v10  ;;  %v1494_v1 = vmul.f32 1.442695, %v1468_v13  ;;  %v1464_v25 = vsub.f32 %v2773_v24, %v2785_v15 }
0x259c   :  { %2229 = vpow2.f32 %v1504_v8  ;;  %v1492_v61 = vmul.f32 1.442695, %v1467_v34  ;;  %v1490_v46 = vmul.f32 1.442695, %v1466_v35  ;;  %v1488_v6 = vmul.f32 1.442695, %v1465_v41 }
0x259d   :  { %2231 = vpow2.f32 %v1502_v11  ;;  %v1463_v30 = vsub.f32 %v2771_v21, %v2785_v15  ;;  %v1486_v26 = vmul.f32 1.442695, %v1464_v25  ;;  %v1462_v24 = vsub.f32 %v2769_v20, %v2785_v15  ;;  %v1506_v8 = vld [vmem:[%s2987_s6] sm:$0xff]  ;;  %v1633_v13 = vld [vmem:[%s2988_s8 + $0x18] sm:$0xff]  ;;  %v1631_v35 = vld [vmem:[%s2988_s8 + $0x8] sm:$0xff] }
0x259e   :  { %2233 = vpow2.f32 %v1500_v9  ;;  %v1461_v21 = vsub.f32 %v2767_v19, %v2785_v15  ;;  %v1460_v20 = vsub.f32 %v2765_v18, %v2785_v15  ;;  %v1459_v19 = vsub.f32 %v2761_v16, %v2785_v15  ;;  %v1584_v41 = vld [vmem:[%s2989_s7] sm:$0xff]  ;;  %v1698_v25 = vld [vmem:[%s2991_s11 + $0x38] sm:$0xff] }
0x259f   :  { %2235 = vpow2.f32 %v1498_v12  ;;  %v1484_v27 = vmul.f32 1.442695, %v1463_v30  ;;  %v1482_v53 = vmul.f32 1.442695, %v1462_v24  ;;  %v1458_v18 = vsub.f32 %v2763_v17, %v2785_v15  ;;  %1714 = vmatpush.msrb.mxu0 %v1698_v25  ;;  %v1694_v30 = vld [vmem:[%s2991_s11 + $0x18] sm:$0xff] }
0x25a0   :  { %2237 = vpow2.f32 %v1496_v14  ;;  %v1480_v55 = vmul.f32 1.442695, %v1461_v21  ;;  %v1478_v60 = vmul.f32 1.442695, %v1460_v20  ;;  %v1476_v2 = vmul.f32 1.442695, %v1459_v19 }
0x25a1   :  { %2239 = vpow2.f32 %v1494_v1  ;;  %v1632_v14 = vld [vmem:[%s2988_s8 + $0x10] sm:$0xff]  ;;  %v1690_v21 = vld [vmem:[%s2992_s10 + $0x38] sm:$0xff]  ;;  %v1683_v19 = vld [vmem:[%s2992_s10] sm:$0xff]  ;;  %v24_v25 = vstv %s2999_s18 }
0x25a2   :  { %v2230_v40 = vpop.eup %2229  ;;  %2241 = vpow2.f32 %v1492_v61  ;;  %v1686_v20 = vld [vmem:[%s2992_s10 + $0x18] sm:$0xff]  ;;  %25 = vst [vmem:[#allocation4] sm:$0x1] %v24_v25 }
0x25a3   :  { %v2232_v33 = vpop.eup %2231  ;;  %1547 = vmatpush.msrb.mxu3 %v2230_v40  ;;  %v1523_v44 = vmul.f32 %v2230_v40, %v2740_v38  ;;  %2243 = vpow2.f32 %v1490_v46  ;;  %v1630_v46 = vld [vmem:[%s2988_s8] sm:$0xff] }
0x25a4   :  { %v2234_v31 = vpop.eup %2233  ;;  %v1522_v51 = vmul.f32 %v2232_v33, %v2738_v36  ;;  %2245 = vpow2.f32 %v1488_v6  ;;  %v1695_v6 = vld [vmem:[%s2991_s11 + $0x20] sm:$0xff] }
0x25a5   :  { %1524 = vmatpush.msra.mxu2 %v1523_v44  ;;  %1548 = vmatpush.msrb.mxu3 %v2232_v33  ;;  %v2236_v47 = vpop.eup %2235  ;;  %v1521_v38 = vmul.f32 %v2234_v31, %v2702_v57  ;;  %2247 = vpow2.f32 %v1486_v26  ;;  %v1585_v33 = vld [vmem:[%s2989_s7 + $0x8] sm:$0xff]  ;;  %v1586_v44 = vld [vmem:[%s2989_s7 + $0x10] sm:$0xff] }
0x25a6   :  { %v2238_v50 = vpop.eup %2237  ;;  %v1520_v36 = vmul.f32 %v2236_v47, %v2700_v56  ;;  %2249 = vpow2.f32 %v1484_v27  ;;  %v1691_v27 = vld [vmem:[%s2991_s11] sm:$0xff] }
0x25a7   :  { %1525 = vmatpush.msra.mxu2 %v1522_v51  ;;  %1549 = vmatpush.msrb.mxu3 %v2234_v31  ;;  %v2240_v42 = vpop.eup %2239  ;;  %v1519_v57 = vmul.f32 %v2238_v50, %v2718_v5  ;;  %2251 = vpow2.f32 %v1482_v53  ;;  %v1587_v31 = vld [vmem:[%s2989_s7 + $0x18] sm:$0xff]  ;;  %v1697_v51 = vld [vmem:[%s2991_s11 + $0x30] sm:$0xff]  ;;  %v1687_v53 = vld [vmem:[%s2992_s10 + $0x20] sm:$0xff] }
0x25a8   :  { %v2242_v52 = vpop.eup %2241  ;;  %v1518_v56 = vmul.f32 %v2240_v42, %v2716_v4  ;;  %2253 = vpow2.f32 %v1480_v55  ;;  %1715 = vmatpush.msrb.mxu0 %v1697_v51  ;;  %v1684_v55 = vld [vmem:[%s2992_s10 + $0x8] sm:$0xff]  ;;  %v2067_v51 = vld [vmem:[%s2997_s16] ss:$0 sm:$0xff] }
0x25a9   :  { %1526 = vmatpush.msra.mxu2 %v1521_v38  ;;  %1550 = vmatpush.msrb.mxu3 %v2236_v47  ;;  %v2244_v54 = vpop.eup %2243  ;;  %v1517_v5 = vmul.f32 %v2242_v52, %v2710_v63  ;;  %2255 = vpow2.f32 %v1478_v60  ;;  %v1474_v63 = vmul.f32 1.442695, %v1458_v18  ;;  %v1696_v47 = vld [vmem:[%s2991_s11 + $0x28] sm:$0xff] }
0x25aa   :  { %v2246_v3 = vpop.eup %2245  ;;  %v1516_v4 = vmul.f32 %v2244_v54, %v2708_v62  ;;  %2257 = vpow2.f32 %v1476_v2  ;;  %1716 = vmatpush.msrb.mxu0 %v1696_v47 }
0x25ab   :  { %1527 = vmatpush.msra.mxu2 %v1520_v36  ;;  %1551 = vmatpush.msrb.mxu3 %v2238_v50  ;;  %v2248_v0 = vpop.eup %2247  ;;  %v1515_v16 = vmul.f32 %v2246_v3, %v2684_v49  ;;  %2259 = vpow2.f32 %v1474_v63  ;;  %v1693_v50 = vld [vmem:[%s2991_s11 + $0x10] sm:$0xff] }
0x25ac   :  { %v2250_v29 = vpop.eup %2249  ;;  %v1514_v58 = vmul.f32 %v2248_v0, %v2686_v48  ;;  %1717 = vmatpush.msrb.mxu0 %v1695_v6 }
0x25ad   :  { %1528 = vmatpush.msra.mxu2 %v1519_v57  ;;  %1552 = vmatpush.msrb.mxu3 %v2240_v42  ;;  %v2252_v7 = vpop.eup %2251  ;;  %v1513_v62 = vmul.f32 %v2250_v29, %v2674_v43  ;;  %v1692_v42 = vld [vmem:[%s2991_s11 + $0x8] sm:$0xff]  ;;  %v1689_v57 = vld [vmem:[%s2992_s10 + $0x30] sm:$0xff] }
0x25ae   :  { %v2254_v17 = vpop.eup %2253  ;;  %v1512_v15 = vmul.f32 %v2252_v7, %v2676_v45  ;;  %1718 = vmatpush.msrb.mxu0 %v1694_v30 }
0x25af   :  { %1529 = vmatpush.msra.mxu2 %v1518_v56  ;;  %1553 = vmatpush.msrb.mxu3 %v2242_v52  ;;  %v2256_v49 = vpop.eup %2255  ;;  %v1511_v59 = vmul.f32 %v2254_v17, %v2663_v37  ;;  %v2276_v37 = vmov 0   ;;  %v1688_v52 = vld [vmem:[%s2992_s10 + $0x28] sm:$0xff] }
0x25b0   :  { %v2258_v28 = vpop.eup %2257  ;;  %v1510_v48 = vmul.f32 %v2256_v49, %v2661_v39  ;;  %v1507_v39 = vld [vmem:[%s2987_s6 + $0x8] sm:$0xff]  ;;  %2060 = vset.pattern.permute.xlu2 %v2276_v37  ;;  %2059 = vset.pattern.permute.xlu1 %v2276_v37 }
0x25b1   :  { %1530 = vmatpush.msra.mxu2 %v1517_v5  ;;  %1554 = vmatpush.msrb.mxu3 %v2244_v54  ;;  %v2260_v32 = vpop.eup %2259  ;;  %v1509_v43 = vmul.f32 %v2258_v28, %v2642_v23  ;;  %v1685_v54 = vld [vmem:[%s2992_s10 + $0x10] sm:$0xff] }
0x25b2   :  { %v1508_v45 = vmul.f32 %v2260_v32, %v2640_v22  ;;  %2061 = vset.pattern.permute.xlu0 %v2276_v37  ;;  %1719 = vmatpush.msrb.mxu0 %v1693_v50  ;;  %v2065_v37 = vld [vmem:[%s2993_s12] ss:$0 sm:$0xff] }
0x25b3   :  { %1531 = vmatpush.msra.mxu2 %v1516_v4  ;;  %1555 = vmatpush.msrb.mxu3 %v2246_v3  ;;  %v2064_v3 = vld [vmem:[%s2990_s9] ss:$0 sm:$0xff] }
0x25b4   :  { %1720 = vmatpush.msrb.mxu0 %v1692_v42 }
0x25b5   :  { %1532 = vmatpush.msra.mxu2 %v1515_v16  ;;  %1556 = vmatpush.msrb.mxu3 %v2248_v0 }
0x25b6   :  { %1721 = vmatpush.msrb.mxu0 %v1691_v27 }
0x25b7   :  { %1533 = vmatpush.msra.mxu2 %v1514_v58  ;;  %1557 = vmatpush.msrb.mxu3 %v2250_v29 }
0x25b8   :  { %1743 = vmatpush.msra.mxu0 %v1690_v21 }
0x25b9   :  { %1534 = vmatpush.msra.mxu2 %v1513_v62  ;;  %1558 = vmatpush.msrb.mxu3 %v2252_v7  ;;  %v1773_v62 = vld [vmem:[%s2995_s13 + $0x38] sm:$0xff] }
0x25ba   :  { %1744 = vmatpush.msra.mxu0 %v1689_v57 }
0x25bb   :  { %1535 = vmatpush.msra.mxu2 %v1512_v15  ;;  %1559 = vmatpush.msrb.mxu3 %v2254_v17  ;;  %v1772_v17 = vld [vmem:[%s2995_s13 + $0x30] sm:$0xff]  ;;  %v1771_v15 = vld [vmem:[%s2995_s13 + $0x28] sm:$0xff] }
0x25bc   :  { %1745 = vmatpush.msra.mxu0 %v1688_v52 }
0x25bd   :  { %1536 = vmatpush.msra.mxu2 %v1511_v59  ;;  %1560 = vmatpush.msrb.mxu3 %v2256_v49  ;;  %v1770_v49 = vld [vmem:[%s2995_s13 + $0x20] sm:$0xff]  ;;  %v1769_v59 = vld [vmem:[%s2995_s13 + $0x18] sm:$0xff] }
0x25be   :  { %1746 = vmatpush.msra.mxu0 %v1687_v53 }
0x25bf   :  { %1537 = vmatpush.msra.mxu2 %v1510_v48  ;;  %1561 = vmatpush.msrb.mxu3 %v2258_v28  ;;  %v1768_v28 = vld [vmem:[%s2995_s13 + $0x10] sm:$0xff]  ;;  %v1767_v48 = vld [vmem:[%s2995_s13 + $0x8] sm:$0xff] }
0x25c0   :  { %1747 = vmatpush.msra.mxu0 %v1686_v20 }
0x25c1   :  { %1538 = vmatpush.msra.mxu2 %v1509_v43  ;;  %1562 = vmatpush.msrb.mxu3 %v2260_v32  ;;  %v1766_v32 = vld [vmem:[%s2995_s13] sm:$0xff]  ;;  %v1812_v43 = vld [vmem:[%s2996_s15 + $0x18] sm:$0xff] }
0x25c2   :  { %1563 = vmatmul.f32.vlgmr.msrb.gmra.mxu3 %v1506_v8  ;;  %1748 = vmatpush.msra.mxu0 %v1685_v54 }
0x25c3   :  { %1539 = vmatpush.msra.mxu2 %v1508_v45  ;;  %1662 = vmatpush.msra.mxu3 %v1633_v13 }
0x25c4   :  { %1540 = vmatmul.f32.vlgmr.msra.gmra.mxu2 %v1506_v8  ;;  %1749 = vmatpush.msra.mxu0 %v1684_v55  ;;  %v1811_v8 = vld [vmem:[%s2996_s15 + $0x10] sm:$0xff] }
0x25c5   :  { %1663 = vmatpush.msra.mxu3 %v1632_v14 }
0x25c6   :  { %1750 = vmatpush.msra.mxu0 %v1683_v19 }
0x25c7   :  { %1664 = vmatpush.msra.mxu3 %v1631_v35  ;;  %v2066_v35 = vld [vmem:[%s2994_s14] ss:$0 sm:$0xff] }
0x25c9   :  { %1665 = vmatpush.msra.mxu3 %v1630_v46  ;;  %v1848_v46 = vld [vmem:[%s2998_s17] sm:$0xff] }
0x25ca   :  { %1566 = vmatmul.f32.gmra.mxu3 %v1507_v39 }
0x25cb   :  { %1835 = vmatpush.msrb.mxu3 %v1812_v43 }
0x25cc   :  { %1543 = vmatmul.f32.gmra.mxu2 %v1507_v39 }
0x25cd   :  { %1836 = vmatpush.msrb.mxu3 %v1811_v8 }
0x2645   :  { %v1564_v23 = vpop.f32.mrf.mxu3 }
0x2646   :  { %2261 = vrcp.f32 %v1564_v23 }
0x2647   :  { %v1541_v10 = vpop.f32.mrf.mxu2 }
0x264c   :  { %v2262_v11 = vpop.eup %2261 }
0x264d   :  { %1574 = vperm.xlu2 %2060, %v2262_v11   ;;  %v1567_v9 = vpop.f32.mrf.mxu3 }
0x264e   :  { %2263 = vrcp.f32 %v1567_v9 }
0x264f   :  { %v1544_v12 = vpop.f32.mrf.mxu2 }
0x2654   :  { %v2264_v22 = vpop.eup %2263 }
0x2655   :  { %1579 = vperm.xlu1 %2059, %v2264_v22  }
0x26a7   :  { %v1575_v34 = vpop.permute.xlu2 %1574 }
0x26a8   :  { %v1582_v61 = vmul.f32 %v1575_v34, %v1541_v10  ;;  %v1810_v34 = vld [vmem:[%s2996_s15 + $0x8] sm:$0xff] }
0x26a9   :  { %1837 = vmatpush.msrb.mxu3 %v1810_v34 }
0x26c7   :  { %v1580_v1 = vpop.permute.xlu1 %1579 }
0x26c8   :  { %v1583_v40 = vmul.f32 %v1580_v1, %v1544_v12  ;;  %v1809_v1 = vld [vmem:[%s2996_s15] sm:$0xff] }
0x26c9   :  { %1838 = vmatpush.msrb.mxu3 %v1809_v1 }
0x26ca   :  { %1615 = vmatpush.msrb.mxu2 %v1583_v40 }
0x26cc   :  { %1616 = vmatpush.msrb.mxu2 %v1582_v61 }
0x26cd   :  { %2022 = vmatmul.msk.f32.vlgmr.msrb.gmra.mxu2 %vm1588_vm11, %v1584_v41 }
0x26ce   :  { %1792 = vmatpush.msra.mxu2 %v1773_v62 }
0x26d0   :  { %1793 = vmatpush.msra.mxu2 %v1772_v17 }
0x26d2   :  { %1794 = vmatpush.msra.mxu2 %v1771_v15 }
0x26d4   :  { %1795 = vmatpush.msra.mxu2 %v1770_v49 }
0x26d5   :  { %2023 = vmatmul.msk.f32.gmra.mxu2 %vm1588_vm11, %v1585_v33 }
0x26d6   :  { %1796 = vmatpush.msra.mxu2 %v1769_v59 }
0x26d8   :  { %1797 = vmatpush.msra.mxu2 %v1768_v28 }
0x26da   :  { %1798 = vmatpush.msra.mxu2 %v1767_v48 }
0x26dc   :  { %1799 = vmatpush.msra.mxu2 %v1766_v32 }
0x26dd   :  { %2024 = vmatmul.msk.f32.gmra.mxu2 %vm1588_vm11, %v1586_v44 }
0x26e5   :  { %2025 = vmatmul.msk.f32.gmra.mxu2 %vm1588_vm11, %v1587_v31 }
0x2750   :  { %v1618_v38 = vpop.f32.mrf.mxu2 }
0x2751   :  { %2026 = vmatmul.msk.f32.vlgmr.msra.gmra.mxu3 %vm266_vm6, %v1618_v38 }
0x2758   :  { %v1621_v26 = vpop.f32.mrf.mxu2 }
0x2759   :  { %2027 = vmatmul.msk.f32.gmra.mxu3 %vm266_vm6, %v1621_v26 }
0x2760   :  { %v1624_v24 = vpop.f32.mrf.mxu2 }
0x2761   :  { %2028 = vmatmul.msk.f32.gmra.mxu3 %vm266_vm6, %v1624_v24  ;;  %v2068_v24 = vld [vmem:[#allocation4] ss:$0 sm:$0xff] }
0x2768   :  { %v1627_v36 = vpop.f32.mrf.mxu2 }
0x2769   :  { %2029 = vmatmul.msk.f32.gmra.mxu3 %vm266_vm6, %v1627_v36 }
0x27d4   :  { %v1667_v56 = vpop.f32.mrf.mxu3 }
0x27d5   :  { %v1668_v29 = vadd.f32 %v2064_v3, %v1667_v56 }
0x27d7   :  { %v1679_v63 = vmax.f32 %v1668_v29, 0.0 }
0x27dc   :  { %v1670_v5 = vpop.f32.mrf.mxu3 }
0x27dd   :  { %v1671_v58 = vadd.f32 %v2064_v3, %v1670_v5 }
0x27df   :  { %v1680_v7 = vmax.f32 %v1671_v58, 0.0 }
0x27e4   :  { %v1673_v60 = vpop.f32.mrf.mxu3 }
0x27e5   :  { %v1674_v18 = vadd.f32 %v2064_v3, %v1673_v60 }
0x27e7   :  { %v1681_v4 = vmax.f32 %v1674_v18, 0.0 }
0x27e9   :  { %2030 = vmatmul.msk.f32.vlgmr.msrb.gmra.mxu0 %vm1699_vm12, %v1681_v4 }
0x27ea   :  { %1874 = vmatpush.msrb.mxu0 %v1848_v46 }
0x27ec   :  { %v1676_v0 = vpop.f32.mrf.mxu3 }
0x27ed   :  { %v1677_v2 = vadd.f32 %v2064_v3, %v1676_v0 }
0x27ef   :  { %v1682_v16 = vmax.f32 %v1677_v2, 0.0 }
0x27f1   :  { %2031 = vmatmul.msk.f32.gmra.mxu0 %vm1699_vm12, %v1682_v16 }
0x27f9   :  { %2032 = vmatmul.msk.f32.vlgmr.msra.gmra.mxu0 %vm1699_vm12, %v1679_v63 }
0x2801   :  { %2033 = vmatmul.msk.f32.gmra.mxu0 %vm1699_vm12, %v1680_v7 }
0x2866   :  { %v1723_v45 = vpop.f32.mrf.mxu0 }
0x286e   :  { %v1726_v39 = vpop.f32.mrf.mxu0 }
0x2876   :  { %v1752_v23 = vpop.f32.mrf.mxu0 }
0x2877   :  { %v1753_v11 = vadd.f32 %v1752_v23, %v1723_v45 }
0x2879   :  { %v1762_v9 = vadd.f32 %v2065_v37, %v1753_v11 }
0x287b   :  { %v1764_v22 = vmax.f32 %v1762_v9, 0.0 }
0x287d   :  { %2034 = vmatmul.msk.f32.vlgmr.msra.gmra.mxu2 %vm1699_vm12, %v1764_v22 }
0x287e   :  { %v1755_v10 = vpop.f32.mrf.mxu0 }
0x287f   :  { %v1756_v12 = vadd.f32 %v1755_v10, %v1726_v39 }
0x2881   :  { %v1763_v13 = vadd.f32 %v2065_v37, %v1756_v12 }
0x2883   :  { %v1765_v14 = vmax.f32 %v1763_v13, 0.0 }
0x2885   :  { %2035 = vmatmul.msk.f32.gmra.mxu2 %vm1699_vm12, %v1765_v14 }
0x2900   :  { %v1801_v40 = vpop.f32.mrf.mxu2 }
0x2901   :  { %v1802_v61 = vadd.f32 %v2066_v35, %v1801_v40 }
0x2903   :  { %v1807_v41 = vmax.f32 %v1802_v61, 0.0 }
0x2905   :  { %2036 = vmatmul.msk.f32.vlgmr.msrb.gmra.mxu3 %vm266_vm6, %v1807_v41 }
0x2908   :  { %v1804_v33 = vpop.f32.mrf.mxu2 }
0x2909   :  { %v1805_v44 = vadd.f32 %v2066_v35, %v1804_v33 }
0x290b   :  { %v1808_v31 = vmax.f32 %v1805_v44, 0.0 }
0x290d   :  { %2037 = vmatmul.msk.f32.gmra.mxu3 %vm266_vm6, %v1808_v31 }
0x2988   :  { %v1840_v47 = vpop.f32.mrf.mxu3 }
0x2989   :  { %v1841_v6 = vadd.f32 %v2067_v51, %v1840_v47 }
0x298b   :  { %v1846_v30 = vmax.f32 %v1841_v6, 0.0 }
0x298d   :  { %2038 = vmatmul.msk.f32.vlgmr.msrb.gmra.mxu0 %vm126_vm1, %v1846_v30 }
0x2990   :  { %v1843_v38 = vpop.f32.mrf.mxu3 }
0x2991   :  { %v1844_v50 = vadd.f32 %v2067_v51, %v1843_v38 }
0x2993   :  { %v1847_v26 = vmax.f32 %v1844_v50, 0.0 }
0x2995   :  { %2039 = vmatmul.msk.f32.gmra.mxu0 %vm126_vm1, %v1847_v26 }
0x2a0a   :  { %v1876_v36 = vpop.f32.mrf.mxu0 }
0x2a0b   :  { %v1877_v42 = vadd.f32 %v2068_v24, %v1876_v36 }
0x2a0d   :  { %v2040_v27 = vmul.f32 -1.442695, %v1877_v42 }
0x2a0f   :  { %2265 = vpow2.f32 %v2040_v27 }
0x2a12   :  { %v1879_v21 = vpop.f32.mrf.mxu0 }
0x2a13   :  { %v1880_v57 = vadd.f32 %v2068_v24, %v1879_v21 }
0x2a15   :  { %v2266_v52 = vpop.eup %2265  ;;  %v2041_v53 = vmul.f32 -1.442695, %v1880_v57 }
0x2a16   :  { %v1888_v20 = vadd.f32 1.0, %v2266_v52 }
0x2a17   :  { %2267 = vpow2.f32 %v2041_v53 }
0x2a18   :  { %2269 = vrcp.f32 %v1888_v20  ;;  %v1901_v3 = vand.u32 2147483648, %v1888_v20  ;;  %v1899_v18 = vand.u32 2147483647, %v1888_v20  ;;  %vm1895_vm6 = vweird.f32 %v1888_v20 }
0x2a1a   :  { %v1902_v2 = vor.u32 1.1754944e-38, %v1901_v3  ;;  %vm1900_vm15 = vcmp.eq.f32.partialorder %v1899_v18, 8.507059e+37 }
0x2a1d   :  { %v2268_v56 = vpop.eup %2267 }
0x2a1e   :  { %v2270_v54 = vpop.eup %2269  ;;  %v1889_v55 = vadd.f32 1.0, %v2268_v56 }
0x2a1f   :  { %v1891_v19 = vmul.f32 %v2270_v54, %v1888_v20  ;;  %vm1896_vm1 = vweird.f32 %v2270_v54 }
0x2a20   :  { %2271 = vrcp.f32 %v1889_v55  ;;  %vm1897_vm13 = vmor %vm1895_vm6, %vm1896_vm1  ;;  %v1916_v7 = vand.u32 2147483648, %v1889_v55  ;;  %v1914_v17 = vand.u32 2147483647, %v1889_v55  ;;  %vm1910_vm2 = vweird.f32 %v1889_v55 }
0x2a21   :  { %v1892_v5 = vsub.f32 1.0, %v1891_v19 }
0x2a22   :  { %v1917_v49 = vor.u32 1.1754944e-38, %v1916_v7  ;;  %vm1915_vm4 = vcmp.eq.f32.partialorder %v1914_v17, 8.507059e+37 }
0x2a23   :  { %v1893_v60 = vmul.f32 %v2270_v54, %v1892_v5 }
0x2a25   :  { %v1894_v4 = vadd.f32 %v2270_v54, %v1893_v60 }
0x2a26   :  { %v2272_v0 = vpop.eup %2271 }
0x2a27   :  { %v1898_v16 = vsel %vm1897_vm13, %v2270_v54, %v1894_v4  ;;  %v1906_v29 = vmul.f32 %v2272_v0, %v1889_v55  ;;  %vm1911_vm0 = vweird.f32 %v2272_v0 }
0x2a28   :  { %v1903_v63 = vsel %vm1900_vm15, %v1902_v2, %v1898_v16  ;;  %vm1912_vm3 = vmor %vm1910_vm2, %vm1911_vm0 }
0x2a29   :  { %1921 = vst.msk [vmem:[%s3000_s19] sm:$0xff] %vm1920_vm14, %v1903_v63  ;;  %v1907_v58 = vsub.f32 1.0, %v1906_v29 }
0x2a2b   :  { %v1908_v62 = vmul.f32 %v2272_v0, %v1907_v58 }
0x2a2d   :  { %v1909_v15 = vadd.f32 %v2272_v0, %v1908_v62 }
0x2a2f   :  { %v1913_v59 = vsel %vm1912_vm3, %v2272_v0, %v1909_v15 }
0x2a30   :  { %v1918_v28 = vsel %vm1915_vm4, %v1917_v49, %v1913_v59 }
0x2a31   :  { %1922 = vst.msk [vmem:[%s3000_s19 + $0x8] sm:$0xff] %vm1920_vm14, %v1918_v28 }

</bundles_post_ra>
